<compile_context>
chip_gen: v7x
topology: tpu7x:2x2x1
jax: 0.10.0
libtpu: 0.0.40
codegen_flags: <defaults>
</compile_context>

<pallas_src>
import jax
import jax.numpy as jnp
from jax import lax
from jax.experimental import pallas as pl
from jax.experimental.pallas import tpu as pltpu

NEG_SLOPE = 0.1   # LeakyReLU negative_slope
K = 7             # kernel_size
PAD = 3           # padding  (2*PAD == K-1  ->  "same" convolution)
BN_EPS = 1e-5


def residual_block(x_nchw, conv_w, conv_b, bn_gamma, bn_beta, bn_mean, bn_var,
                   *, compute_dtype=jnp.bfloat16):
    B, C, H, W = x_nchw.shape
    Cout = conv_w.shape[0]
    assert Cout == C, "residual add requires in_channels == out_channels"
    assert 2 * PAD == K - 1

    Hp, Wp = H + 2 * PAD, W + 2 * PAD
    L = H * Wp                                    # flat span covering every valid (h, w)
    LX = ((Hp * Wp + K - 1 + 127) // 128) * 128   # padded-image length, lane-aligned

    cdt = jnp.dtype(compute_dtype)
    xdt = jnp.dtype(x_nchw.dtype)

    # ---- glue (pure layout, no math) -------------------------------------------
    # Zero-padded image, flattened over (Hp, Wp), zero-extended to LX lanes.
    x_pad = jnp.pad(x_nchw, ((0, 0), (0, 0), (PAD, PAD), (PAD, PAD)))
    x_ext = x_pad.reshape(B, C, Hp * Wp)
    x_ext = jnp.pad(x_ext, ((0, 0), (0, 0), (0, LX - Hp * Wp))).astype(compute_dtype)

    # Residual stream in the same row-padded flat layout: index h*Wp + w.
    x_res = jnp.pad(x_nchw, ((0, 0), (0, 0), (0, 0), (0, Wp - W))).reshape(B, C, L)

    # Fold conv bias + BatchNorm (eval mode) into a weight scale + per-channel shift.
    scale = bn_gamma / jnp.sqrt(bn_var + BN_EPS)                         # [Cout]
    shift2 = ((conv_b - bn_mean) * scale + bn_beta).astype(jnp.float32).reshape(Cout, 1)
    w_scaled = conv_w * scale[:, None, None, None]                       # [Cout, C, K, K]
    # [Cout, C, K, K] -> [K*K, Cout, C]   (tap-major; w3[kh*K+kw] == W[:, :, kh, kw])
    w3 = jnp.transpose(w_scaled, (2, 3, 0, 1)).reshape(K * K, Cout, C).astype(compute_dtype)

    # ---- kernel: one grid step == one batch image -------------------------------
    def kernel(x_ref, w_ref, shift_ref, res_ref, o_ref):
        xv = x_ref[0]                                       # (C, LX), compute dtype
        acc = jnp.zeros((Cout, L), jnp.float32)
        # 49 taps, statically unrolled: tap (kh, kw) is the lane-offset slice
        # starting at kh*Wp + kw, contracted on the MXU with f32 accumulation.
        for kh in range(K):
            for kw in range(K):
                t = kh * K + kw
                s = kh * Wp + kw
                tap = xv[:, s:s + L]                        # (C, L), static offset
                acc = acc + jnp.dot(w_ref[t], tap,
                                    preferred_element_type=jnp.float32)
        # Epilogue in f32: folded BN shift, LeakyReLU, residual add.
        y = acc + shift_ref[...]                            # (Cout, L) + (Cout, 1)
        y = jnp.where(y >= 0, y, NEG_SLOPE * y)
        o_ref[0] = (res_ref[0].astype(jnp.float32) + y).astype(o_ref.dtype)

    # ---- cost / VMEM sizing ------------------------------------------------------
    flops = 2 * B * H * W * K * K * C * Cout
    bytes_accessed = (B * C * LX * cdt.itemsize          # padded image stream
                      + B * C * L * xdt.itemsize         # residual stream
                      + K * K * Cout * C * cdt.itemsize  # folded weights
                      + Cout * 4                         # shift
                      + B * Cout * L * xdt.itemsize)     # output
    cost = pl.CostEstimate(flops=flops, transcendentals=0,
                           bytes_accessed=int(bytes_accessed))

    block_bytes = (2 * (C * LX * cdt.itemsize            # double-buffered image
                        + C * L * xdt.itemsize           # double-buffered residual
                        + Cout * L * xdt.itemsize)       # double-buffered output
                   + K * K * Cout * C * cdt.itemsize + Cout * 4)
    # >= default scoped limit, capped below v7x's 64 MiB physical VMEM.
    vmem_limit = int(min(max(4 * block_bytes, 32 * 1024 * 1024), 64 * 1024 * 1024))

    out_flat = pl.pallas_call(
        kernel,
        out_shape=jax.ShapeDtypeStruct((B, Cout, L), x_nchw.dtype),
        grid_spec=pltpu.PrefetchScalarGridSpec(
            num_scalar_prefetch=0,
            grid=(B,),
            in_specs=[
                pl.BlockSpec((1, C, LX), lambda b: (b, 0, 0)),        # padded image
                pl.BlockSpec((K * K, Cout, C), lambda b: (0, 0, 0)),  # folded weights
                pl.BlockSpec((Cout, 1), lambda b: (0, 0)),            # BN shift
                pl.BlockSpec((1, C, L), lambda b: (b, 0, 0)),         # residual
            ],
            out_specs=pl.BlockSpec((1, Cout, L), lambda b: (b, 0, 0)),
        ),
        compiler_params=pltpu.CompilerParams(
            dimension_semantics=("parallel",),
            vmem_limit_bytes=vmem_limit),
        cost_estimate=cost,
    )(x_ext, w3, shift2, x_res)

    # Drop the (Wp - W) padded columns; layout is already NCHW (channel-major).
    out = out_flat.reshape(B, Cout, H, Wp)[:, :, :, :W]
    return out


def residual_block_ref(x_nchw, conv_w, conv_b, g, b, m, v):
    """Pure-JAX reference (mirrors the PyTorch forward in eval mode)."""
    y = lax.conv_general_dilated(
        x_nchw, conv_w, window_strides=(1, 1),
        padding=((PAD, PAD), (PAD, PAD)),
        dimension_numbers=("NCHW", "OIHW", "NCHW"))
    y = y + conv_b.reshape(1, -1, 1, 1)
    y = (y - m.reshape(1, -1, 1, 1)) / jnp.sqrt(v.reshape(1, -1, 1, 1) + BN_EPS)
    y = y * g.reshape(1, -1, 1, 1) + b.reshape(1, -1, 1, 1)
    y = jnp.where(y >= 0, y, NEG_SLOPE * y)
    return x_nchw + y


if __name__ == "__main__":
    key = jax.random.PRNGKey(0)
    k_x, k_w, k_b, k_g, k_be, k_m, k_v = jax.random.split(key, 7)

    B, C, H, W = 2, 4, 16, 16
    x = jax.random.normal(k_x, (B, C, H, W), dtype=jnp.float32)

    # ResidualBlock(in_channels=4, out_channels=4, kernel_size=7, stride=1,
    #               padding=3, negative_slope=0.1, pooling=False)
    conv_w = 0.05 * jax.random.normal(k_w, (C, C, K, K), dtype=jnp.float32)
    conv_b = 0.05 * jax.random.normal(k_b, (C,), dtype=jnp.float32)
    bn_gamma = 1.0 + 0.1 * jax.random.normal(k_g, (C,), dtype=jnp.float32)
    bn_beta = 0.1 * jax.random.normal(k_be, (C,), dtype=jnp.float32)
    bn_mean = 0.05 * jax.random.normal(k_m, (C,), dtype=jnp.float32)
    bn_var = 1.0 + 0.1 * jax.random.uniform(k_v, (C,), dtype=jnp.float32)

    ref = residual_block_ref(x, conv_w, conv_b, bn_gamma, bn_beta, bn_mean, bn_var)

    # f32 compute path: tight check against the f32 reference.
    out_f32 = residual_block(x, conv_w, conv_b, bn_gamma, bn_beta, bn_mean, bn_var,
                             compute_dtype=jnp.float32)
    out_f32 = jax.block_until_ready(out_f32)
    assert out_f32.shape == (B, C, H, W)
    assert jnp.allclose(out_f32, ref, atol=1e-4, rtol=1e-4), \
        f"f32 max err {jnp.max(jnp.abs(out_f32 - ref))}"

    # bf16 GEMM operands (f32 accumulate + f32 epilogue): the fast path;
    # tolerance loosened for the bf16 operand quantization.
    out_bf16 = residual_block(x, conv_w, conv_b, bn_gamma, bn_beta, bn_mean, bn_var,
                              compute_dtype=jnp.bfloat16)
    out_bf16 = jax.block_until_ready(out_bf16)
    assert out_bf16.shape == (B, C, H, W)
    assert jnp.allclose(out_bf16, ref, atol=3e-2, rtol=3e-2), \
        f"bf16 max err {jnp.max(jnp.abs(out_bf16 - ref))}"

    print("KERNEL_OK")
</pallas_src>

<mosaic_0001>
module attributes {stable_mosaic.version = 11 : i64} {
  func.func @kernel(%arg0: i32, %arg1: memref<1x4x512xf32, #tpu.memory_space<vmem>>, %arg2: memref<49x4x4xf32, #tpu.memory_space<vmem>>, %arg3: memref<4x1xf32, #tpu.memory_space<vmem>>, %arg4: memref<1x4x352xf32, #tpu.memory_space<vmem>>, %arg5: memref<1x4x352xf32, #tpu.memory_space<vmem>>) attributes {dimension_semantics = [#tpu.dimension_semantics<parallel>], iteration_bounds = array<i64: 2>, scalar_prefetch = 0 : i64, scratch_operands = 0 : i64, tpu.core_type = #tpu.core_type<tc>, window_params = [{transform_indices = @transform_0, window_bounds = array<i64: 1, 4, 512>}, {pipeline_mode = #tpu.pipeline_mode<synchronous>, transform_indices = @transform_1, window_bounds = array<i64: 49, 4, 4>}, {pipeline_mode = #tpu.pipeline_mode<synchronous>, transform_indices = @transform_2, window_bounds = array<i64: 4, 1>}, {transform_indices = @transform_3, window_bounds = array<i64: 1, 4, 352>}, {transform_indices = @transform_4, window_bounds = array<i64: 1, 4, 352>}]} {
    %c0 = arith.constant 0 : index
    %c0_0 = arith.constant 0 : index
    %c0_1 = arith.constant 0 : index
    %0 = vector.load %arg1[%c0, %c0_0, %c0_1] : memref<1x4x512xf32, #tpu.memory_space<vmem>>, vector<1x4x512xf32>
    %1 = vector.shape_cast %0 : vector<1x4x512xf32> to vector<4x512xf32>
    %cst = arith.constant 0.000000e+00 : f32
    %2 = vector.broadcast %cst : f32 to vector<4x352xf32>
    %3 = vector.extract_strided_slice %1 {offsets = [0, 0], sizes = [4, 352], strides = [1, 1]} : vector<4x512xf32> to vector<4x352xf32>
    %c0_2 = arith.constant 0 : index
    %c0_3 = arith.constant 0 : index
    %c0_4 = arith.constant 0 : index
    %4 = vector.load %arg2[%c0_2, %c0_3, %c0_4] : memref<49x4x4xf32, #tpu.memory_space<vmem>>, vector<1x4x4xf32>
    %5 = vector.shape_cast %4 : vector<1x4x4xf32> to vector<4x4xf32>
    %cst_5 = arith.constant dense<0.000000e+00> : vector<4x352xf32>
    %6 = tpu.matmul %5, %3, %cst_5 {dimension_numbers = #tpu.dot_dimension_numbers<[1], [0], [0], [1], [0, 0, 1, 1], [], []>} : vector<4x4xf32>, vector<4x352xf32>, vector<4x352xf32> -> vector<4x352xf32>
    %7 = arith.addf %2, %6 : vector<4x352xf32>
    %8 = vector.extract_strided_slice %1 {offsets = [0, 1], sizes = [4, 352], strides = [1, 1]} : vector<4x512xf32> to vector<4x352xf32>
    %c1 = arith.constant 1 : index
    %c0_6 = arith.constant 0 : index
    %c0_7 = arith.constant 0 : index
    %9 = vector.load %arg2[%c1, %c0_6, %c0_7] : memref<49x4x4xf32, #tpu.memory_space<vmem>>, vector<1x4x4xf32>
    %10 = vector.shape_cast %9 : vector<1x4x4xf32> to vector<4x4xf32>
    %cst_8 = arith.constant dense<0.000000e+00> : vector<4x352xf32>
    %11 = tpu.matmul %10, %8, %cst_8 {dimension_numbers = #tpu.dot_dimension_numbers<[1], [0], [0], [1], [0, 0, 1, 1], [], []>} : vector<4x4xf32>, vector<4x352xf32>, vector<4x352xf32> -> vector<4x352xf32>
    %12 = arith.addf %7, %11 : vector<4x352xf32>
    %13 = vector.extract_strided_slice %1 {offsets = [0, 2], sizes = [4, 352], strides = [1, 1]} : vector<4x512xf32> to vector<4x352xf32>
    %c2 = arith.constant 2 : index
    %c0_9 = arith.constant 0 : index
    %c0_10 = arith.constant 0 : index
    %14 = vector.load %arg2[%c2, %c0_9, %c0_10] : memref<49x4x4xf32, #tpu.memory_space<vmem>>, vector<1x4x4xf32>
    %15 = vector.shape_cast %14 : vector<1x4x4xf32> to vector<4x4xf32>
    %cst_11 = arith.constant dense<0.000000e+00> : vector<4x352xf32>
    %16 = tpu.matmul %15, %13, %cst_11 {dimension_numbers = #tpu.dot_dimension_numbers<[1], [0], [0], [1], [0, 0, 1, 1], [], []>} : vector<4x4xf32>, vector<4x352xf32>, vector<4x352xf32> -> vector<4x352xf32>
    %17 = arith.addf %12, %16 : vector<4x352xf32>
    %18 = vector.extract_strided_slice %1 {offsets = [0, 3], sizes = [4, 352], strides = [1, 1]} : vector<4x512xf32> to vector<4x352xf32>
    %c3 = arith.constant 3 : index
    %c0_12 = arith.constant 0 : index
    %c0_13 = arith.constant 0 : index
    %19 = vector.load %arg2[%c3, %c0_12, %c0_13] : memref<49x4x4xf32, #tpu.memory_space<vmem>>, vector<1x4x4xf32>
    %20 = vector.shape_cast %19 : vector<1x4x4xf32> to vector<4x4xf32>
    %cst_14 = arith.constant dense<0.000000e+00> : vector<4x352xf32>
    %21 = tpu.matmul %20, %18, %cst_14 {dimension_numbers = #tpu.dot_dimension_numbers<[1], [0], [0], [1], [0, 0, 1, 1], [], []>} : vector<4x4xf32>, vector<4x352xf32>, vector<4x352xf32> -> vector<4x352xf32>
    %22 = arith.addf %17, %21 : vector<4x352xf32>
    %23 = vector.extract_strided_slice %1 {offsets = [0, 4], sizes = [4, 352], strides = [1, 1]} : vector<4x512xf32> to vector<4x352xf32>
    %c4 = arith.constant 4 : index
    %c0_15 = arith.constant 0 : index
    %c0_16 = arith.constant 0 : index
    %24 = vector.load %arg2[%c4, %c0_15, %c0_16] : memref<49x4x4xf32, #tpu.memory_space<vmem>>, vector<1x4x4xf32>
    %25 = vector.shape_cast %24 : vector<1x4x4xf32> to vector<4x4xf32>
    %cst_17 = arith.constant dense<0.000000e+00> : vector<4x352xf32>
    %26 = tpu.matmul %25, %23, %cst_17 {dimension_numbers = #tpu.dot_dimension_numbers<[1], [0], [0], [1], [0, 0, 1, 1], [], []>} : vector<4x4xf32>, vector<4x352xf32>, vector<4x352xf32> -> vector<4x352xf32>
    %27 = arith.addf %22, %26 : vector<4x352xf32>
    %28 = vector.extract_strided_slice %1 {offsets = [0, 5], sizes = [4, 352], strides = [1, 1]} : vector<4x512xf32> to vector<4x352xf32>
    %c5 = arith.constant 5 : index
    %c0_18 = arith.constant 0 : index
    %c0_19 = arith.constant 0 : index
    %29 = vector.load %arg2[%c5, %c0_18, %c0_19] : memref<49x4x4xf32, #tpu.memory_space<vmem>>, vector<1x4x4xf32>
    %30 = vector.shape_cast %29 : vector<1x4x4xf32> to vector<4x4xf32>
    %cst_20 = arith.constant dense<0.000000e+00> : vector<4x352xf32>
    %31 = tpu.matmul %30, %28, %cst_20 {dimension_numbers = #tpu.dot_dimension_numbers<[1], [0], [0], [1], [0, 0, 1, 1], [], []>} : vector<4x4xf32>, vector<4x352xf32>, vector<4x352xf32> -> vector<4x352xf32>
    %32 = arith.addf %27, %31 : vector<4x352xf32>
    %33 = vector.extract_strided_slice %1 {offsets = [0, 6], sizes = [4, 352], strides = [1, 1]} : vector<4x512xf32> to vector<4x352xf32>
    %c6 = arith.constant 6 : index
    %c0_21 = arith.constant 0 : index
    %c0_22 = arith.constant 0 : index
    %34 = vector.load %arg2[%c6, %c0_21, %c0_22] : memref<49x4x4xf32, #tpu.memory_space<vmem>>, vector<1x4x4xf32>
    %35 = vector.shape_cast %34 : vector<1x4x4xf32> to vector<4x4xf32>
    %cst_23 = arith.constant dense<0.000000e+00> : vector<4x352xf32>
    %36 = tpu.matmul %35, %33, %cst_23 {dimension_numbers = #tpu.dot_dimension_numbers<[1], [0], [0], [1], [0, 0, 1, 1], [], []>} : vector<4x4xf32>, vector<4x352xf32>, vector<4x352xf32> -> vector<4x352xf32>
    %37 = arith.addf %32, %36 : vector<4x352xf32>
    %38 = vector.extract_strided_slice %1 {offsets = [0, 22], sizes = [4, 352], strides = [1, 1]} : vector<4x512xf32> to vector<4x352xf32>
    %c7 = arith.constant 7 : index
    %c0_24 = arith.constant 0 : index
    %c0_25 = arith.constant 0 : index
    %39 = vector.load %arg2[%c7, %c0_24, %c0_25] : memref<49x4x4xf32, #tpu.memory_space<vmem>>, vector<1x4x4xf32>
    %40 = vector.shape_cast %39 : vector<1x4x4xf32> to vector<4x4xf32>
    %cst_26 = arith.constant dense<0.000000e+00> : vector<4x352xf32>
    %41 = tpu.matmul %40, %38, %cst_26 {dimension_numbers = #tpu.dot_dimension_numbers<[1], [0], [0], [1], [0, 0, 1, 1], [], []>} : vector<4x4xf32>, vector<4x352xf32>, vector<4x352xf32> -> vector<4x352xf32>
    %42 = arith.addf %37, %41 : vector<4x352xf32>
    %43 = vector.extract_strided_slice %1 {offsets = [0, 23], sizes = [4, 352], strides = [1, 1]} : vector<4x512xf32> to vector<4x352xf32>
    %c8 = arith.constant 8 : index
    %c0_27 = arith.constant 0 : index
    %c0_28 = arith.constant 0 : index
    %44 = vector.load %arg2[%c8, %c0_27, %c0_28] : memref<49x4x4xf32, #tpu.memory_space<vmem>>, vector<1x4x4xf32>
    %45 = vector.shape_cast %44 : vector<1x4x4xf32> to vector<4x4xf32>
    %cst_29 = arith.constant dense<0.000000e+00> : vector<4x352xf32>
    %46 = tpu.matmul %45, %43, %cst_29 {dimension_numbers = #tpu.dot_dimension_numbers<[1], [0], [0], [1], [0, 0, 1, 1], [], []>} : vector<4x4xf32>, vector<4x352xf32>, vector<4x352xf32> -> vector<4x352xf32>
    %47 = arith.addf %42, %46 : vector<4x352xf32>
    %48 = vector.extract_strided_slice %1 {offsets = [0, 24], sizes = [4, 352], strides = [1, 1]} : vector<4x512xf32> to vector<4x352xf32>
    %c9 = arith.constant 9 : index
    %c0_30 = arith.constant 0 : index
    %c0_31 = arith.constant 0 : index
    %49 = vector.load %arg2[%c9, %c0_30, %c0_31] : memref<49x4x4xf32, #tpu.memory_space<vmem>>, vector<1x4x4xf32>
    %50 = vector.shape_cast %49 : vector<1x4x4xf32> to vector<4x4xf32>
    %cst_32 = arith.constant dense<0.000000e+00> : vector<4x352xf32>
    %51 = tpu.matmul %50, %48, %cst_32 {dimension_numbers = #tpu.dot_dimension_numbers<[1], [0], [0], [1], [0, 0, 1, 1], [], []>} : vector<4x4xf32>, vector<4x352xf32>, vector<4x352xf32> -> vector<4x352xf32>
    %52 = arith.addf %47, %51 : vector<4x352xf32>
    %53 = vector.extract_strided_slice %1 {offsets = [0, 25], sizes = [4, 352], strides = [1, 1]} : vector<4x512xf32> to vector<4x352xf32>
    %c10 = arith.constant 10 : index
    %c0_33 = arith.constant 0 : index
    %c0_34 = arith.constant 0 : index
    %54 = vector.load %arg2[%c10, %c0_33, %c0_34] : memref<49x4x4xf32, #tpu.memory_space<vmem>>, vector<1x4x4xf32>
    %55 = vector.shape_cast %54 : vector<1x4x4xf32> to vector<4x4xf32>
    %cst_35 = arith.constant dense<0.000000e+00> : vector<4x352xf32>
    %56 = tpu.matmul %55, %53, %cst_35 {dimension_numbers = #tpu.dot_dimension_numbers<[1], [0], [0], [1], [0, 0, 1, 1], [], []>} : vector<4x4xf32>, vector<4x352xf32>, vector<4x352xf32> -> vector<4x352xf32>
    %57 = arith.addf %52, %56 : vector<4x352xf32>
    %58 = vector.extract_strided_slice %1 {offsets = [0, 26], sizes = [4, 352], strides = [1, 1]} : vector<4x512xf32> to vector<4x352xf32>
    %c11 = arith.constant 11 : index
    %c0_36 = arith.constant 0 : index
    %c0_37 = arith.constant 0 : index
    %59 = vector.load %arg2[%c11, %c0_36, %c0_37] : memref<49x4x4xf32, #tpu.memory_space<vmem>>, vector<1x4x4xf32>
    %60 = vector.shape_cast %59 : vector<1x4x4xf32> to vector<4x4xf32>
    %cst_38 = arith.constant dense<0.000000e+00> : vector<4x352xf32>
    %61 = tpu.matmul %60, %58, %cst_38 {dimension_numbers = #tpu.dot_dimension_numbers<[1], [0], [0], [1], [0, 0, 1, 1], [], []>} : vector<4x4xf32>, vector<4x352xf32>, vector<4x352xf32> -> vector<4x352xf32>
    %62 = arith.addf %57, %61 : vector<4x352xf32>
    %63 = vector.extract_strided_slice %1 {offsets = [0, 27], sizes = [4, 352], strides = [1, 1]} : vector<4x512xf32> to vector<4x352xf32>
    %c12 = arith.constant 12 : index
    %c0_39 = arith.constant 0 : index
    %c0_40 = arith.constant 0 : index
    %64 = vector.load %arg2[%c12, %c0_39, %c0_40] : memref<49x4x4xf32, #tpu.memory_space<vmem>>, vector<1x4x4xf32>
    %65 = vector.shape_cast %64 : vector<1x4x4xf32> to vector<4x4xf32>
    %cst_41 = arith.constant dense<0.000000e+00> : vector<4x352xf32>
    %66 = tpu.matmul %65, %63, %cst_41 {dimension_numbers = #tpu.dot_dimension_numbers<[1], [0], [0], [1], [0, 0, 1, 1], [], []>} : vector<4x4xf32>, vector<4x352xf32>, vector<4x352xf32> -> vector<4x352xf32>
    %67 = arith.addf %62, %66 : vector<4x352xf32>
    %68 = vector.extract_strided_slice %1 {offsets = [0, 28], sizes = [4, 352], strides = [1, 1]} : vector<4x512xf32> to vector<4x352xf32>
    %c13 = arith.constant 13 : index
    %c0_42 = arith.constant 0 : index
    %c0_43 = arith.constant 0 : index
    %69 = vector.load %arg2[%c13, %c0_42, %c0_43] : memref<49x4x4xf32, #tpu.memory_space<vmem>>, vector<1x4x4xf32>
    %70 = vector.shape_cast %69 : vector<1x4x4xf32> to vector<4x4xf32>
    %cst_44 = arith.constant dense<0.000000e+00> : vector<4x352xf32>
    %71 = tpu.matmul %70, %68, %cst_44 {dimension_numbers = #tpu.dot_dimension_numbers<[1], [0], [0], [1], [0, 0, 1, 1], [], []>} : vector<4x4xf32>, vector<4x352xf32>, vector<4x352xf32> -> vector<4x352xf32>
    %72 = arith.addf %67, %71 : vector<4x352xf32>
    %73 = vector.extract_strided_slice %1 {offsets = [0, 44], sizes = [4, 352], strides = [1, 1]} : vector<4x512xf32> to vector<4x352xf32>
    %c14 = arith.constant 14 : index
    %c0_45 = arith.constant 0 : index
    %c0_46 = arith.constant 0 : index
    %74 = vector.load %arg2[%c14, %c0_45, %c0_46] : memref<49x4x4xf32, #tpu.memory_space<vmem>>, vector<1x4x4xf32>
    %75 = vector.shape_cast %74 : vector<1x4x4xf32> to vector<4x4xf32>
    %cst_47 = arith.constant dense<0.000000e+00> : vector<4x352xf32>
    %76 = tpu.matmul %75, %73, %cst_47 {dimension_numbers = #tpu.dot_dimension_numbers<[1], [0], [0], [1], [0, 0, 1, 1], [], []>} : vector<4x4xf32>, vector<4x352xf32>, vector<4x352xf32> -> vector<4x352xf32>
    %77 = arith.addf %72, %76 : vector<4x352xf32>
    %78 = vector.extract_strided_slice %1 {offsets = [0, 45], sizes = [4, 352], strides = [1, 1]} : vector<4x512xf32> to vector<4x352xf32>
    %c15 = arith.constant 15 : index
    %c0_48 = arith.constant 0 : index
    %c0_49 = arith.constant 0 : index
    %79 = vector.load %arg2[%c15, %c0_48, %c0_49] : memref<49x4x4xf32, #tpu.memory_space<vmem>>, vector<1x4x4xf32>
    %80 = vector.shape_cast %79 : vector<1x4x4xf32> to vector<4x4xf32>
    %cst_50 = arith.constant dense<0.000000e+00> : vector<4x352xf32>
    %81 = tpu.matmul %80, %78, %cst_50 {dimension_numbers = #tpu.dot_dimension_numbers<[1], [0], [0], [1], [0, 0, 1, 1], [], []>} : vector<4x4xf32>, vector<4x352xf32>, vector<4x352xf32> -> vector<4x352xf32>
    %82 = arith.addf %77, %81 : vector<4x352xf32>
    %83 = vector.extract_strided_slice %1 {offsets = [0, 46], sizes = [4, 352], strides = [1, 1]} : vector<4x512xf32> to vector<4x352xf32>
    %c16 = arith.constant 16 : index
    %c0_51 = arith.constant 0 : index
    %c0_52 = arith.constant 0 : index
    %84 = vector.load %arg2[%c16, %c0_51, %c0_52] : memref<49x4x4xf32, #tpu.memory_space<vmem>>, vector<1x4x4xf32>
    %85 = vector.shape_cast %84 : vector<1x4x4xf32> to vector<4x4xf32>
    %cst_53 = arith.constant dense<0.000000e+00> : vector<4x352xf32>
    %86 = tpu.matmul %85, %83, %cst_53 {dimension_numbers = #tpu.dot_dimension_numbers<[1], [0], [0], [1], [0, 0, 1, 1], [], []>} : vector<4x4xf32>, vector<4x352xf32>, vector<4x352xf32> -> vector<4x352xf32>
    %87 = arith.addf %82, %86 : vector<4x352xf32>
    %88 = vector.extract_strided_slice %1 {offsets = [0, 47], sizes = [4, 352], strides = [1, 1]} : vector<4x512xf32> to vector<4x352xf32>
    %c17 = arith.constant 17 : index
    %c0_54 = arith.constant 0 : index
    %c0_55 = arith.constant 0 : index
    %89 = vector.load %arg2[%c17, %c0_54, %c0_55] : memref<49x4x4xf32, #tpu.memory_space<vmem>>, vector<1x4x4xf32>
    %90 = vector.shape_cast %89 : vector<1x4x4xf32> to vector<4x4xf32>
    %cst_56 = arith.constant dense<0.000000e+00> : vector<4x352xf32>
    %91 = tpu.matmul %90, %88, %cst_56 {dimension_numbers = #tpu.dot_dimension_numbers<[1], [0], [0], [1], [0, 0, 1, 1], [], []>} : vector<4x4xf32>, vector<4x352xf32>, vector<4x352xf32> -> vector<4x352xf32>
    %92 = arith.addf %87, %91 : vector<4x352xf32>
    %93 = vector.extract_strided_slice %1 {offsets = [0, 48], sizes = [4, 352], strides = [1, 1]} : vector<4x512xf32> to vector<4x352xf32>
    %c18 = arith.constant 18 : index
    %c0_57 = arith.constant 0 : index
    %c0_58 = arith.constant 0 : index
    %94 = vector.load %arg2[%c18, %c0_57, %c0_58] : memref<49x4x4xf32, #tpu.memory_space<vmem>>, vector<1x4x4xf32>
    %95 = vector.shape_cast %94 : vector<1x4x4xf32> to vector<4x4xf32>
    %cst_59 = arith.constant dense<0.000000e+00> : vector<4x352xf32>
    %96 = tpu.matmul %95, %93, %cst_59 {dimension_numbers = #tpu.dot_dimension_numbers<[1], [0], [0], [1], [0, 0, 1, 1], [], []>} : vector<4x4xf32>, vector<4x352xf32>, vector<4x352xf32> -> vector<4x352xf32>
    %97 = arith.addf %92, %96 : vector<4x352xf32>
    %98 = vector.extract_strided_slice %1 {offsets = [0, 49], sizes = [4, 352], strides = [1, 1]} : vector<4x512xf32> to vector<4x352xf32>
    %c19 = arith.constant 19 : index
    %c0_60 = arith.constant 0 : index
    %c0_61 = arith.constant 0 : index
    %99 = vector.load %arg2[%c19, %c0_60, %c0_61] : memref<49x4x4xf32, #tpu.memory_space<vmem>>, vector<1x4x4xf32>
    %100 = vector.shape_cast %99 : vector<1x4x4xf32> to vector<4x4xf32>
    %cst_62 = arith.constant dense<0.000000e+00> : vector<4x352xf32>
    %101 = tpu.matmul %100, %98, %cst_62 {dimension_numbers = #tpu.dot_dimension_numbers<[1], [0], [0], [1], [0, 0, 1, 1], [], []>} : vector<4x4xf32>, vector<4x352xf32>, vector<4x352xf32> -> vector<4x352xf32>
    %102 = arith.addf %97, %101 : vector<4x352xf32>
    %103 = vector.extract_strided_slice %1 {offsets = [0, 50], sizes = [4, 352], strides = [1, 1]} : vector<4x512xf32> to vector<4x352xf32>
    %c20 = arith.constant 20 : index
    %c0_63 = arith.constant 0 : index
    %c0_64 = arith.constant 0 : index
    %104 = vector.load %arg2[%c20, %c0_63, %c0_64] : memref<49x4x4xf32, #tpu.memory_space<vmem>>, vector<1x4x4xf32>
    %105 = vector.shape_cast %104 : vector<1x4x4xf32> to vector<4x4xf32>
    %cst_65 = arith.constant dense<0.000000e+00> : vector<4x352xf32>
    %106 = tpu.matmul %105, %103, %cst_65 {dimension_numbers = #tpu.dot_dimension_numbers<[1], [0], [0], [1], [0, 0, 1, 1], [], []>} : vector<4x4xf32>, vector<4x352xf32>, vector<4x352xf32> -> vector<4x352xf32>
    %107 = arith.addf %102, %106 : vector<4x352xf32>
    %108 = vector.extract_strided_slice %1 {offsets = [0, 66], sizes = [4, 352], strides = [1, 1]} : vector<4x512xf32> to vector<4x352xf32>
    %c21 = arith.constant 21 : index
    %c0_66 = arith.constant 0 : index
    %c0_67 = arith.constant 0 : index
    %109 = vector.load %arg2[%c21, %c0_66, %c0_67] : memref<49x4x4xf32, #tpu.memory_space<vmem>>, vector<1x4x4xf32>
    %110 = vector.shape_cast %109 : vector<1x4x4xf32> to vector<4x4xf32>
    %cst_68 = arith.constant dense<0.000000e+00> : vector<4x352xf32>
    %111 = tpu.matmul %110, %108, %cst_68 {dimension_numbers = #tpu.dot_dimension_numbers<[1], [0], [0], [1], [0, 0, 1, 1], [], []>} : vector<4x4xf32>, vector<4x352xf32>, vector<4x352xf32> -> vector<4x352xf32>
    %112 = arith.addf %107, %111 : vector<4x352xf32>
    %113 = vector.extract_strided_slice %1 {offsets = [0, 67], sizes = [4, 352], strides = [1, 1]} : vector<4x512xf32> to vector<4x352xf32>
    %c22 = arith.constant 22 : index
    %c0_69 = arith.constant 0 : index
    %c0_70 = arith.constant 0 : index
    %114 = vector.load %arg2[%c22, %c0_69, %c0_70] : memref<49x4x4xf32, #tpu.memory_space<vmem>>, vector<1x4x4xf32>
    %115 = vector.shape_cast %114 : vector<1x4x4xf32> to vector<4x4xf32>
    %cst_71 = arith.constant dense<0.000000e+00> : vector<4x352xf32>
    %116 = tpu.matmul %115, %113, %cst_71 {dimension_numbers = #tpu.dot_dimension_numbers<[1], [0], [0], [1], [0, 0, 1, 1], [], []>} : vector<4x4xf32>, vector<4x352xf32>, vector<4x352xf32> -> vector<4x352xf32>
    %117 = arith.addf %112, %116 : vector<4x352xf32>
    %118 = vector.extract_strided_slice %1 {offsets = [0, 68], sizes = [4, 352], strides = [1, 1]} : vector<4x512xf32> to vector<4x352xf32>
    %c23 = arith.constant 23 : index
    %c0_72 = arith.constant 0 : index
    %c0_73 = arith.constant 0 : index
    %119 = vector.load %arg2[%c23, %c0_72, %c0_73] : memref<49x4x4xf32, #tpu.memory_space<vmem>>, vector<1x4x4xf32>
    %120 = vector.shape_cast %119 : vector<1x4x4xf32> to vector<4x4xf32>
    %cst_74 = arith.constant dense<0.000000e+00> : vector<4x352xf32>
    %121 = tpu.matmul %120, %118, %cst_74 {dimension_numbers = #tpu.dot_dimension_numbers<[1], [0], [0], [1], [0, 0, 1, 1], [], []>} : vector<4x4xf32>, vector<4x352xf32>, vector<4x352xf32> -> vector<4x352xf32>
    %122 = arith.addf %117, %121 : vector<4x352xf32>
    %123 = vector.extract_strided_slice %1 {offsets = [0, 69], sizes = [4, 352], strides = [1, 1]} : vector<4x512xf32> to vector<4x352xf32>
    %c24 = arith.constant 24 : index
    %c0_75 = arith.constant 0 : index
    %c0_76 = arith.constant 0 : index
    %124 = vector.load %arg2[%c24, %c0_75, %c0_76] : memref<49x4x4xf32, #tpu.memory_space<vmem>>, vector<1x4x4xf32>
    %125 = vector.shape_cast %124 : vector<1x4x4xf32> to vector<4x4xf32>
    %cst_77 = arith.constant dense<0.000000e+00> : vector<4x352xf32>
    %126 = tpu.matmul %125, %123, %cst_77 {dimension_numbers = #tpu.dot_dimension_numbers<[1], [0], [0], [1], [0, 0, 1, 1], [], []>} : vector<4x4xf32>, vector<4x352xf32>, vector<4x352xf32> -> vector<4x352xf32>
    %127 = arith.addf %122, %126 : vector<4x352xf32>
    %128 = vector.extract_strided_slice %1 {offsets = [0, 70], sizes = [4, 352], strides = [1, 1]} : vector<4x512xf32> to vector<4x352xf32>
    %c25 = arith.constant 25 : index
    %c0_78 = arith.constant 0 : index
    %c0_79 = arith.constant 0 : index
    %129 = vector.load %arg2[%c25, %c0_78, %c0_79] : memref<49x4x4xf32, #tpu.memory_space<vmem>>, vector<1x4x4xf32>
    %130 = vector.shape_cast %129 : vector<1x4x4xf32> to vector<4x4xf32>
    %cst_80 = arith.constant dense<0.000000e+00> : vector<4x352xf32>
    %131 = tpu.matmul %130, %128, %cst_80 {dimension_numbers = #tpu.dot_dimension_numbers<[1], [0], [0], [1], [0, 0, 1, 1], [], []>} : vector<4x4xf32>, vector<4x352xf32>, vector<4x352xf32> -> vector<4x352xf32>
    %132 = arith.addf %127, %131 : vector<4x352xf32>
    %133 = vector.extract_strided_slice %1 {offsets = [0, 71], sizes = [4, 352], strides = [1, 1]} : vector<4x512xf32> to vector<4x352xf32>
    %c26 = arith.constant 26 : index
    %c0_81 = arith.constant 0 : index
    %c0_82 = arith.constant 0 : index
    %134 = vector.load %arg2[%c26, %c0_81, %c0_82] : memref<49x4x4xf32, #tpu.memory_space<vmem>>, vector<1x4x4xf32>
    %135 = vector.shape_cast %134 : vector<1x4x4xf32> to vector<4x4xf32>
    %cst_83 = arith.constant dense<0.000000e+00> : vector<4x352xf32>
    %136 = tpu.matmul %135, %133, %cst_83 {dimension_numbers = #tpu.dot_dimension_numbers<[1], [0], [0], [1], [0, 0, 1, 1], [], []>} : vector<4x4xf32>, vector<4x352xf32>, vector<4x352xf32> -> vector<4x352xf32>
    %137 = arith.addf %132, %136 : vector<4x352xf32>
    %138 = vector.extract_strided_slice %1 {offsets = [0, 72], sizes = [4, 352], strides = [1, 1]} : vector<4x512xf32> to vector<4x352xf32>
    %c27 = arith.constant 27 : index
    %c0_84 = arith.constant 0 : index
    %c0_85 = arith.constant 0 : index
    %139 = vector.load %arg2[%c27, %c0_84, %c0_85] : memref<49x4x4xf32, #tpu.memory_space<vmem>>, vector<1x4x4xf32>
    %140 = vector.shape_cast %139 : vector<1x4x4xf32> to vector<4x4xf32>
    %cst_86 = arith.constant dense<0.000000e+00> : vector<4x352xf32>
    %141 = tpu.matmul %140, %138, %cst_86 {dimension_numbers = #tpu.dot_dimension_numbers<[1], [0], [0], [1], [0, 0, 1, 1], [], []>} : vector<4x4xf32>, vector<4x352xf32>, vector<4x352xf32> -> vector<4x352xf32>
    %142 = arith.addf %137, %141 : vector<4x352xf32>
    %143 = vector.extract_strided_slice %1 {offsets = [0, 88], sizes = [4, 352], strides = [1, 1]} : vector<4x512xf32> to vector<4x352xf32>
    %c28 = arith.constant 28 : index
    %c0_87 = arith.constant 0 : index
    %c0_88 = arith.constant 0 : index
    %144 = vector.load %arg2[%c28, %c0_87, %c0_88] : memref<49x4x4xf32, #tpu.memory_space<vmem>>, vector<1x4x4xf32>
    %145 = vector.shape_cast %144 : vector<1x4x4xf32> to vector<4x4xf32>
    %cst_89 = arith.constant dense<0.000000e+00> : vector<4x352xf32>
    %146 = tpu.matmul %145, %143, %cst_89 {dimension_numbers = #tpu.dot_dimension_numbers<[1], [0], [0], [1], [0, 0, 1, 1], [], []>} : vector<4x4xf32>, vector<4x352xf32>, vector<4x352xf32> -> vector<4x352xf32>
    %147 = arith.addf %142, %146 : vector<4x352xf32>
    %148 = vector.extract_strided_slice %1 {offsets = [0, 89], sizes = [4, 352], strides = [1, 1]} : vector<4x512xf32> to vector<4x352xf32>
    %c29 = arith.constant 29 : index
    %c0_90 = arith.constant 0 : index
    %c0_91 = arith.constant 0 : index
    %149 = vector.load %arg2[%c29, %c0_90, %c0_91] : memref<49x4x4xf32, #tpu.memory_space<vmem>>, vector<1x4x4xf32>
    %150 = vector.shape_cast %149 : vector<1x4x4xf32> to vector<4x4xf32>
    %cst_92 = arith.constant dense<0.000000e+00> : vector<4x352xf32>
    %151 = tpu.matmul %150, %148, %cst_92 {dimension_numbers = #tpu.dot_dimension_numbers<[1], [0], [0], [1], [0, 0, 1, 1], [], []>} : vector<4x4xf32>, vector<4x352xf32>, vector<4x352xf32> -> vector<4x352xf32>
    %152 = arith.addf %147, %151 : vector<4x352xf32>
    %153 = vector.extract_strided_slice %1 {offsets = [0, 90], sizes = [4, 352], strides = [1, 1]} : vector<4x512xf32> to vector<4x352xf32>
    %c30 = arith.constant 30 : index
    %c0_93 = arith.constant 0 : index
    %c0_94 = arith.constant 0 : index
    %154 = vector.load %arg2[%c30, %c0_93, %c0_94] : memref<49x4x4xf32, #tpu.memory_space<vmem>>, vector<1x4x4xf32>
    %155 = vector.shape_cast %154 : vector<1x4x4xf32> to vector<4x4xf32>
    %cst_95 = arith.constant dense<0.000000e+00> : vector<4x352xf32>
    %156 = tpu.matmul %155, %153, %cst_95 {dimension_numbers = #tpu.dot_dimension_numbers<[1], [0], [0], [1], [0, 0, 1, 1], [], []>} : vector<4x4xf32>, vector<4x352xf32>, vector<4x352xf32> -> vector<4x352xf32>
    %157 = arith.addf %152, %156 : vector<4x352xf32>
    %158 = vector.extract_strided_slice %1 {offsets = [0, 91], sizes = [4, 352], strides = [1, 1]} : vector<4x512xf32> to vector<4x352xf32>
    %c31 = arith.constant 31 : index
    %c0_96 = arith.constant 0 : index
    %c0_97 = arith.constant 0 : index
    %159 = vector.load %arg2[%c31, %c0_96, %c0_97] : memref<49x4x4xf32, #tpu.memory_space<vmem>>, vector<1x4x4xf32>
    %160 = vector.shape_cast %159 : vector<1x4x4xf32> to vector<4x4xf32>
    %cst_98 = arith.constant dense<0.000000e+00> : vector<4x352xf32>
    %161 = tpu.matmul %160, %158, %cst_98 {dimension_numbers = #tpu.dot_dimension_numbers<[1], [0], [0], [1], [0, 0, 1, 1], [], []>} : vector<4x4xf32>, vector<4x352xf32>, vector<4x352xf32> -> vector<4x352xf32>
    %162 = arith.addf %157, %161 : vector<4x352xf32>
    %163 = vector.extract_strided_slice %1 {offsets = [0, 92], sizes = [4, 352], strides = [1, 1]} : vector<4x512xf32> to vector<4x352xf32>
    %c32 = arith.constant 32 : index
    %c0_99 = arith.constant 0 : index
    %c0_100 = arith.constant 0 : index
    %164 = vector.load %arg2[%c32, %c0_99, %c0_100] : memref<49x4x4xf32, #tpu.memory_space<vmem>>, vector<1x4x4xf32>
    %165 = vector.shape_cast %164 : vector<1x4x4xf32> to vector<4x4xf32>
    %cst_101 = arith.constant dense<0.000000e+00> : vector<4x352xf32>
    %166 = tpu.matmul %165, %163, %cst_101 {dimension_numbers = #tpu.dot_dimension_numbers<[1], [0], [0], [1], [0, 0, 1, 1], [], []>} : vector<4x4xf32>, vector<4x352xf32>, vector<4x352xf32> -> vector<4x352xf32>
    %167 = arith.addf %162, %166 : vector<4x352xf32>
    %168 = vector.extract_strided_slice %1 {offsets = [0, 93], sizes = [4, 352], strides = [1, 1]} : vector<4x512xf32> to vector<4x352xf32>
    %c33 = arith.constant 33 : index
    %c0_102 = arith.constant 0 : index
    %c0_103 = arith.constant 0 : index
    %169 = vector.load %arg2[%c33, %c0_102, %c0_103] : memref<49x4x4xf32, #tpu.memory_space<vmem>>, vector<1x4x4xf32>
    %170 = vector.shape_cast %169 : vector<1x4x4xf32> to vector<4x4xf32>
    %cst_104 = arith.constant dense<0.000000e+00> : vector<4x352xf32>
    %171 = tpu.matmul %170, %168, %cst_104 {dimension_numbers = #tpu.dot_dimension_numbers<[1], [0], [0], [1], [0, 0, 1, 1], [], []>} : vector<4x4xf32>, vector<4x352xf32>, vector<4x352xf32> -> vector<4x352xf32>
    %172 = arith.addf %167, %171 : vector<4x352xf32>
    %173 = vector.extract_strided_slice %1 {offsets = [0, 94], sizes = [4, 352], strides = [1, 1]} : vector<4x512xf32> to vector<4x352xf32>
    %c34 = arith.constant 34 : index
    %c0_105 = arith.constant 0 : index
    %c0_106 = arith.constant 0 : index
    %174 = vector.load %arg2[%c34, %c0_105, %c0_106] : memref<49x4x4xf32, #tpu.memory_space<vmem>>, vector<1x4x4xf32>
    %175 = vector.shape_cast %174 : vector<1x4x4xf32> to vector<4x4xf32>
    %cst_107 = arith.constant dense<0.000000e+00> : vector<4x352xf32>
    %176 = tpu.matmul %175, %173, %cst_107 {dimension_numbers = #tpu.dot_dimension_numbers<[1], [0], [0], [1], [0, 0, 1, 1], [], []>} : vector<4x4xf32>, vector<4x352xf32>, vector<4x352xf32> -> vector<4x352xf32>
    %177 = arith.addf %172, %176 : vector<4x352xf32>
    %178 = vector.extract_strided_slice %1 {offsets = [0, 110], sizes = [4, 352], strides = [1, 1]} : vector<4x512xf32> to vector<4x352xf32>
    %c35 = arith.constant 35 : index
    %c0_108 = arith.constant 0 : index
    %c0_109 = arith.constant 0 : index
    %179 = vector.load %arg2[%c35, %c0_108, %c0_109] : memref<49x4x4xf32, #tpu.memory_space<vmem>>, vector<1x4x4xf32>
    %180 = vector.shape_cast %179 : vector<1x4x4xf32> to vector<4x4xf32>
    %cst_110 = arith.constant dense<0.000000e+00> : vector<4x352xf32>
    %181 = tpu.matmul %180, %178, %cst_110 {dimension_numbers = #tpu.dot_dimension_numbers<[1], [0], [0], [1], [0, 0, 1, 1], [], []>} : vector<4x4xf32>, vector<4x352xf32>, vector<4x352xf32> -> vector<4x352xf32>
    %182 = arith.addf %177, %181 : vector<4x352xf32>
    %183 = vector.extract_strided_slice %1 {offsets = [0, 111], sizes = [4, 352], strides = [1, 1]} : vector<4x512xf32> to vector<4x352xf32>
    %c36 = arith.constant 36 : index
    %c0_111 = arith.constant 0 : index
    %c0_112 = arith.constant 0 : index
    %184 = vector.load %arg2[%c36, %c0_111, %c0_112] : memref<49x4x4xf32, #tpu.memory_space<vmem>>, vector<1x4x4xf32>
    %185 = vector.shape_cast %184 : vector<1x4x4xf32> to vector<4x4xf32>
    %cst_113 = arith.constant dense<0.000000e+00> : vector<4x352xf32>
    %186 = tpu.matmul %185, %183, %cst_113 {dimension_numbers = #tpu.dot_dimension_numbers<[1], [0], [0], [1], [0, 0, 1, 1], [], []>} : vector<4x4xf32>, vector<4x352xf32>, vector<4x352xf32> -> vector<4x352xf32>
    %187 = arith.addf %182, %186 : vector<4x352xf32>
    %188 = vector.extract_strided_slice %1 {offsets = [0, 112], sizes = [4, 352], strides = [1, 1]} : vector<4x512xf32> to vector<4x352xf32>
    %c37 = arith.constant 37 : index
    %c0_114 = arith.constant 0 : index
    %c0_115 = arith.constant 0 : index
    %189 = vector.load %arg2[%c37, %c0_114, %c0_115] : memref<49x4x4xf32, #tpu.memory_space<vmem>>, vector<1x4x4xf32>
    %190 = vector.shape_cast %189 : vector<1x4x4xf32> to vector<4x4xf32>
    %cst_116 = arith.constant dense<0.000000e+00> : vector<4x352xf32>
    %191 = tpu.matmul %190, %188, %cst_116 {dimension_numbers = #tpu.dot_dimension_numbers<[1], [0], [0], [1], [0, 0, 1, 1], [], []>} : vector<4x4xf32>, vector<4x352xf32>, vector<4x352xf32> -> vector<4x352xf32>
    %192 = arith.addf %187, %191 : vector<4x352xf32>
    %193 = vector.extract_strided_slice %1 {offsets = [0, 113], sizes = [4, 352], strides = [1, 1]} : vector<4x512xf32> to vector<4x352xf32>
    %c38 = arith.constant 38 : index
    %c0_117 = arith.constant 0 : index
    %c0_118 = arith.constant 0 : index
    %194 = vector.load %arg2[%c38, %c0_117, %c0_118] : memref<49x4x4xf32, #tpu.memory_space<vmem>>, vector<1x4x4xf32>
    %195 = vector.shape_cast %194 : vector<1x4x4xf32> to vector<4x4xf32>
    %cst_119 = arith.constant dense<0.000000e+00> : vector<4x352xf32>
    %196 = tpu.matmul %195, %193, %cst_119 {dimension_numbers = #tpu.dot_dimension_numbers<[1], [0], [0], [1], [0, 0, 1, 1], [], []>} : vector<4x4xf32>, vector<4x352xf32>, vector<4x352xf32> -> vector<4x352xf32>
    %197 = arith.addf %192, %196 : vector<4x352xf32>
    %198 = vector.extract_strided_slice %1 {offsets = [0, 114], sizes = [4, 352], strides = [1, 1]} : vector<4x512xf32> to vector<4x352xf32>
    %c39 = arith.constant 39 : index
    %c0_120 = arith.constant 0 : index
    %c0_121 = arith.constant 0 : index
    %199 = vector.load %arg2[%c39, %c0_120, %c0_121] : memref<49x4x4xf32, #tpu.memory_space<vmem>>, vector<1x4x4xf32>
    %200 = vector.shape_cast %199 : vector<1x4x4xf32> to vector<4x4xf32>
    %cst_122 = arith.constant dense<0.000000e+00> : vector<4x352xf32>
    %201 = tpu.matmul %200, %198, %cst_122 {dimension_numbers = #tpu.dot_dimension_numbers<[1], [0], [0], [1], [0, 0, 1, 1], [], []>} : vector<4x4xf32>, vector<4x352xf32>, vector<4x352xf32> -> vector<4x352xf32>
    %202 = arith.addf %197, %201 : vector<4x352xf32>
    %203 = vector.extract_strided_slice %1 {offsets = [0, 115], sizes = [4, 352], strides = [1, 1]} : vector<4x512xf32> to vector<4x352xf32>
    %c40 = arith.constant 40 : index
    %c0_123 = arith.constant 0 : index
    %c0_124 = arith.constant 0 : index
    %204 = vector.load %arg2[%c40, %c0_123, %c0_124] : memref<49x4x4xf32, #tpu.memory_space<vmem>>, vector<1x4x4xf32>
    %205 = vector.shape_cast %204 : vector<1x4x4xf32> to vector<4x4xf32>
    %cst_125 = arith.constant dense<0.000000e+00> : vector<4x352xf32>
    %206 = tpu.matmul %205, %203, %cst_125 {dimension_numbers = #tpu.dot_dimension_numbers<[1], [0], [0], [1], [0, 0, 1, 1], [], []>} : vector<4x4xf32>, vector<4x352xf32>, vector<4x352xf32> -> vector<4x352xf32>
    %207 = arith.addf %202, %206 : vector<4x352xf32>
    %208 = vector.extract_strided_slice %1 {offsets = [0, 116], sizes = [4, 352], strides = [1, 1]} : vector<4x512xf32> to vector<4x352xf32>
    %c41 = arith.constant 41 : index
    %c0_126 = arith.constant 0 : index
    %c0_127 = arith.constant 0 : index
    %209 = vector.load %arg2[%c41, %c0_126, %c0_127] : memref<49x4x4xf32, #tpu.memory_space<vmem>>, vector<1x4x4xf32>
    %210 = vector.shape_cast %209 : vector<1x4x4xf32> to vector<4x4xf32>
    %cst_128 = arith.constant dense<0.000000e+00> : vector<4x352xf32>
    %211 = tpu.matmul %210, %208, %cst_128 {dimension_numbers = #tpu.dot_dimension_numbers<[1], [0], [0], [1], [0, 0, 1, 1], [], []>} : vector<4x4xf32>, vector<4x352xf32>, vector<4x352xf32> -> vector<4x352xf32>
    %212 = arith.addf %207, %211 : vector<4x352xf32>
    %213 = vector.extract_strided_slice %1 {offsets = [0, 132], sizes = [4, 352], strides = [1, 1]} : vector<4x512xf32> to vector<4x352xf32>
    %c42 = arith.constant 42 : index
    %c0_129 = arith.constant 0 : index
    %c0_130 = arith.constant 0 : index
    %214 = vector.load %arg2[%c42, %c0_129, %c0_130] : memref<49x4x4xf32, #tpu.memory_space<vmem>>, vector<1x4x4xf32>
    %215 = vector.shape_cast %214 : vector<1x4x4xf32> to vector<4x4xf32>
    %cst_131 = arith.constant dense<0.000000e+00> : vector<4x352xf32>
    %216 = tpu.matmul %215, %213, %cst_131 {dimension_numbers = #tpu.dot_dimension_numbers<[1], [0], [0], [1], [0, 0, 1, 1], [], []>} : vector<4x4xf32>, vector<4x352xf32>, vector<4x352xf32> -> vector<4x352xf32>
    %217 = arith.addf %212, %216 : vector<4x352xf32>
    %218 = vector.extract_strided_slice %1 {offsets = [0, 133], sizes = [4, 352], strides = [1, 1]} : vector<4x512xf32> to vector<4x352xf32>
    %c43 = arith.constant 43 : index
    %c0_132 = arith.constant 0 : index
    %c0_133 = arith.constant 0 : index
    %219 = vector.load %arg2[%c43, %c0_132, %c0_133] : memref<49x4x4xf32, #tpu.memory_space<vmem>>, vector<1x4x4xf32>
    %220 = vector.shape_cast %219 : vector<1x4x4xf32> to vector<4x4xf32>
    %cst_134 = arith.constant dense<0.000000e+00> : vector<4x352xf32>
    %221 = tpu.matmul %220, %218, %cst_134 {dimension_numbers = #tpu.dot_dimension_numbers<[1], [0], [0], [1], [0, 0, 1, 1], [], []>} : vector<4x4xf32>, vector<4x352xf32>, vector<4x352xf32> -> vector<4x352xf32>
    %222 = arith.addf %217, %221 : vector<4x352xf32>
    %223 = vector.extract_strided_slice %1 {offsets = [0, 134], sizes = [4, 352], strides = [1, 1]} : vector<4x512xf32> to vector<4x352xf32>
    %c44 = arith.constant 44 : index
    %c0_135 = arith.constant 0 : index
    %c0_136 = arith.constant 0 : index
    %224 = vector.load %arg2[%c44, %c0_135, %c0_136] : memref<49x4x4xf32, #tpu.memory_space<vmem>>, vector<1x4x4xf32>
    %225 = vector.shape_cast %224 : vector<1x4x4xf32> to vector<4x4xf32>
    %cst_137 = arith.constant dense<0.000000e+00> : vector<4x352xf32>
    %226 = tpu.matmul %225, %223, %cst_137 {dimension_numbers = #tpu.dot_dimension_numbers<[1], [0], [0], [1], [0, 0, 1, 1], [], []>} : vector<4x4xf32>, vector<4x352xf32>, vector<4x352xf32> -> vector<4x352xf32>
    %227 = arith.addf %222, %226 : vector<4x352xf32>
    %228 = vector.extract_strided_slice %1 {offsets = [0, 135], sizes = [4, 352], strides = [1, 1]} : vector<4x512xf32> to vector<4x352xf32>
    %c45 = arith.constant 45 : index
    %c0_138 = arith.constant 0 : index
    %c0_139 = arith.constant 0 : index
    %229 = vector.load %arg2[%c45, %c0_138, %c0_139] : memref<49x4x4xf32, #tpu.memory_space<vmem>>, vector<1x4x4xf32>
    %230 = vector.shape_cast %229 : vector<1x4x4xf32> to vector<4x4xf32>
    %cst_140 = arith.constant dense<0.000000e+00> : vector<4x352xf32>
    %231 = tpu.matmul %230, %228, %cst_140 {dimension_numbers = #tpu.dot_dimension_numbers<[1], [0], [0], [1], [0, 0, 1, 1], [], []>} : vector<4x4xf32>, vector<4x352xf32>, vector<4x352xf32> -> vector<4x352xf32>
    %232 = arith.addf %227, %231 : vector<4x352xf32>
    %233 = vector.extract_strided_slice %1 {offsets = [0, 136], sizes = [4, 352], strides = [1, 1]} : vector<4x512xf32> to vector<4x352xf32>
    %c46 = arith.constant 46 : index
    %c0_141 = arith.constant 0 : index
    %c0_142 = arith.constant 0 : index
    %234 = vector.load %arg2[%c46, %c0_141, %c0_142] : memref<49x4x4xf32, #tpu.memory_space<vmem>>, vector<1x4x4xf32>
    %235 = vector.shape_cast %234 : vector<1x4x4xf32> to vector<4x4xf32>
    %cst_143 = arith.constant dense<0.000000e+00> : vector<4x352xf32>
    %236 = tpu.matmul %235, %233, %cst_143 {dimension_numbers = #tpu.dot_dimension_numbers<[1], [0], [0], [1], [0, 0, 1, 1], [], []>} : vector<4x4xf32>, vector<4x352xf32>, vector<4x352xf32> -> vector<4x352xf32>
    %237 = arith.addf %232, %236 : vector<4x352xf32>
    %238 = vector.extract_strided_slice %1 {offsets = [0, 137], sizes = [4, 352], strides = [1, 1]} : vector<4x512xf32> to vector<4x352xf32>
    %c47 = arith.constant 47 : index
    %c0_144 = arith.constant 0 : index
    %c0_145 = arith.constant 0 : index
    %239 = vector.load %arg2[%c47, %c0_144, %c0_145] : memref<49x4x4xf32, #tpu.memory_space<vmem>>, vector<1x4x4xf32>
    %240 = vector.shape_cast %239 : vector<1x4x4xf32> to vector<4x4xf32>
    %cst_146 = arith.constant dense<0.000000e+00> : vector<4x352xf32>
    %241 = tpu.matmul %240, %238, %cst_146 {dimension_numbers = #tpu.dot_dimension_numbers<[1], [0], [0], [1], [0, 0, 1, 1], [], []>} : vector<4x4xf32>, vector<4x352xf32>, vector<4x352xf32> -> vector<4x352xf32>
    %242 = arith.addf %237, %241 : vector<4x352xf32>
    %243 = vector.extract_strided_slice %1 {offsets = [0, 138], sizes = [4, 352], strides = [1, 1]} : vector<4x512xf32> to vector<4x352xf32>
    %c48 = arith.constant 48 : index
    %c0_147 = arith.constant 0 : index
    %c0_148 = arith.constant 0 : index
    %244 = vector.load %arg2[%c48, %c0_147, %c0_148] : memref<49x4x4xf32, #tpu.memory_space<vmem>>, vector<1x4x4xf32>
    %245 = vector.shape_cast %244 : vector<1x4x4xf32> to vector<4x4xf32>
    %cst_149 = arith.constant dense<0.000000e+00> : vector<4x352xf32>
    %246 = tpu.matmul %245, %243, %cst_149 {dimension_numbers = #tpu.dot_dimension_numbers<[1], [0], [0], [1], [0, 0, 1, 1], [], []>} : vector<4x4xf32>, vector<4x352xf32>, vector<4x352xf32> -> vector<4x352xf32>
    %247 = arith.addf %242, %246 : vector<4x352xf32>
    %c0_150 = arith.constant 0 : index
    %c0_151 = arith.constant 0 : index
    %248 = vector.load %arg3[%c0_150, %c0_151] : memref<4x1xf32, #tpu.memory_space<vmem>>, vector<4x1xf32>
    %249 = vector.broadcast %248 : vector<4x1xf32> to vector<4x352xf32>
    %250 = arith.addf %247, %249 : vector<4x352xf32>
    %cst_152 = arith.constant 0.000000e+00 : f32
    %251 = vector.broadcast %cst_152 : f32 to vector<4x352xf32>
    %252 = arith.cmpf oge, %250, %251 : vector<4x352xf32>
    %cst_153 = arith.constant 1.000000e-01 : f32
    %253 = vector.broadcast %cst_153 : f32 to vector<4x352xf32>
    %254 = arith.mulf %253, %250 : vector<4x352xf32>
    %255 = arith.select %252, %250, %254 : vector<4x352xi1>, vector<4x352xf32>
    %c0_154 = arith.constant 0 : index
    %c0_155 = arith.constant 0 : index
    %c0_156 = arith.constant 0 : index
    %256 = vector.load %arg4[%c0_154, %c0_155, %c0_156] : memref<1x4x352xf32, #tpu.memory_space<vmem>>, vector<1x4x352xf32>
    %257 = vector.shape_cast %256 : vector<1x4x352xf32> to vector<4x352xf32>
    %258 = arith.addf %257, %255 : vector<4x352xf32>
    %c0_157 = arith.constant 0 : index
    %c0_158 = arith.constant 0 : index
    %c0_159 = arith.constant 0 : index
    %259 = vector.load %arg5[%c0_157, %c0_158, %c0_159] : memref<1x4x352xf32, #tpu.memory_space<vmem>>, vector<1x4x352xf32>
    %260 = vector.shape_cast %259 : vector<1x4x352xf32> to vector<4x352xf32>
    %261 = vector.shape_cast %258 : vector<4x352xf32> to vector<1x4x352xf32>
    tpu.vector_store %arg5[%c0_157, %c0_158, %c0_159], %261 {strides = array<i32>} : memref<1x4x352xf32, #tpu.memory_space<vmem>>, vector<1x4x352xf32>,
    return
  }
  func.func @transform_0(%arg0: i32) -> (i32, i32, i32) {
    %c0_i32 = arith.constant 0 : i32
    %c0_i32_0 = arith.constant 0 : i32
    %c0_i32_1 = arith.constant 0 : i32
    return %arg0, %c0_i32, %c0_i32_0 : i32, i32, i32
  }
  func.func @transform_1(%arg0: i32) -> (i32, i32, i32) {
    %c0_i32 = arith.constant 0 : i32
    %c0_i32_0 = arith.constant 0 : i32
    %c0_i32_1 = arith.constant 0 : i32
    %c0_i32_2 = arith.constant 0 : i32
    return %c0_i32, %c0_i32_0, %c0_i32_1 : i32, i32, i32
  }
  func.func @transform_2(%arg0: i32) -> (i32, i32) {
    %c0_i32 = arith.constant 0 : i32
    %c0_i32_0 = arith.constant 0 : i32
    %c0_i32_1 = arith.constant 0 : i32
    return %c0_i32, %c0_i32_0 : i32, i32
  }
  func.func @transform_3(%arg0: i32) -> (i32, i32, i32) {
    %c0_i32 = arith.constant 0 : i32
    %c0_i32_0 = arith.constant 0 : i32
    %c0_i32_1 = arith.constant 0 : i32
    return %arg0, %c0_i32, %c0_i32_0 : i32, i32, i32
  }
  func.func @transform_4(%arg0: i32) -> (i32, i32, i32) {
    %c0_i32 = arith.constant 0 : i32
    %c0_i32_0 = arith.constant 0 : i32
    %c0_i32_1 = arith.constant 0 : i32
    return %arg0, %c0_i32, %c0_i32_0 : i32, i32, i32
  }
}

</mosaic_0001>

<bundles_post_ra>
// kernel: tpu_custom_call.1
= control target key start
LH: loop header
LB: loop body
LE: loop exit
PB: predicated region body
PF: predicated region fallthrough
CT: control target
= control target key end

     0   :  { %9 = vsyncpa [#allocation3], 0  ;;  %s11009_s0 = inlined_call_operand.vmem [shape: f32[2,4,512], index: 0, kind: input, shape index: {}]   ;;  %s11010_s1 = inlined_call_operand.vmem [shape: f32[49,4,4], index: 1, kind: input, shape index: {}]   ;;  %s11011_s2 = inlined_call_operand.vmem [shape: f32[4,1], index: 2, kind: input, shape index: {}]   ;;  %s11012_s3 = inlined_call_operand.vmem [shape: f32[2,4,352], index: 3, kind: input, shape index: {}]   ;;  %s11013_s4 = inlined_call_operand.hbm [shape: f32[2,4,352], index: 4, kind: output, shape index: {}]  }
   0x1   :  { %11 = vsyncpa [#allocation3 + $0x1], 0  ;;  %s9394_s15 = smov 0   ;;  %s9396_s16 = smov 0  }
   0x2   :  { %s9398_s17 = smov 0   ;;  %s9400_s18 = smov 0  }
   0x3 LB: > { %s9415_s19 = sadd.s32 4294967295, %s9318_s18   ;;  %s8419_s20 = sadd.s32 4294967294, %s9318_s18   ;;  %s9318_s18 = sphi %s9400_s18, %s11044_s18   ;;  %s9314_s17 = sphi %s9398_s17, %s11043_s17   ;;  %s9310_s16 = sphi %s9396_s16, %s11042_s16   ;;  %s9306_s15 = sphi %s9394_s15, %s11041_s15  }
   0x4   : > { %s9419_s21 = sadd.s32 1, %s9318_s18   ;;  %s118_s22 = sadd.s32 1, %s9314_s17 }
   0x5   : > { %s115_s23 = ssub.s32 %s9318_s18, %s9419_s21  ;;  %p128_p0 = scmp.ne.s32.totalorder %s9314_s17, %s9310_s16 }
   0x6   : > { %p116_p1 = scmp.eq.s32.totalorder %s115_s23, 0  ;;  %p129_p2 = scmp.eq.s32.totalorder %s9415_s19, 1 }
   0x7   : > { %p134_p3 = scmp.ne.s32.totalorder %s9310_s16, %s9306_s15  ;;  %p135_p4 = scmp.eq.s32.totalorder %s8419_s20, 1 }
   0x8   : > { %s9430_s24 = scalar_select %p116_p1, %s9314_s17, %s118_s22  }
   0x9   : > { %p9432_p5 = por %p129_p2, %p128_p0  ;;  %p9436_p6 = por %p135_p4, %p134_p3 }
   0xa   : > { %p8422_p7 = scmp.ge.s32.totalorder %s9318_s18, 1  ;;  %p175_p8 = scmp.lt.s32.totalorder %s9318_s18, 3 }
   0xc   : > { %p176_p9 = pnand %p8422_p7, %p175_p8 }
   0xd   : > { %p206_p10 = scmp.lt.s32.totalorder (!%p176_p9), %s9415_s19, 1  ;;  %v9320_v0 = vmov (!%p176_p9), 0.0   ;;  %vm9321_vm0 = vmmov (!%p176_p9), 0   ;;  %s9322_s6 = smov (!%p176_p9), 127   ;;  %vm237_vm1 = vcmask (!%p176_p9), 1043456   ;;  %vm230_vm2 = vcmask (!%p176_p9), 1039360  }
   0xe   : > { %179 = sbr.rel (%p176_p9) target bundleno = 771 (0x303), region = 36  ;;  %8821 = vmatprep.subr.mxu1 (!%p176_p9), %v9320_v0  ;;  %308 = vmatprep.mubr.f32.mxu0 (!%p176_p9), %v9320_v0  ;;  %s9323_s7 = smov (!%p176_p9), 126   ;;  %v8426_v9 = vld [vmem:[%s11010_s1 + $0x4] sm:$0xf] (!%p176_p9)  ;;  %vm233_vm3 = vcmask (!%p176_p9), 31744   ;;  %vm543_vm4 = vcmask (!%p176_p9), 1031168  }
   0xf   : > { %8823 = vmatprep.mubr.msk.f32.mxu1 (!%p176_p9), %vm9321_vm0, %v9320_v0  ;;  %s9324_s8 = smov (!%p176_p9), 125   ;;  %s11016_s9 = smov (!%p176_p9), 124   ;;  %vm707_vm5 = vcmask (!%p176_p9), 1022976   ;;  %v218_v16 = vld [vmem:[%s11010_s1] sm:$0xf] (!%p176_p9)  ;;  %vm11024_vm6 = vcmask (!%p176_p9), 1014784  }
  0x10   : > { %s11015_s10 = smov (!%p176_p9), 123   ;;  %s11014_s11 = smov (!%p176_p9), 122   ;;  %v8437_v22 = vld [vmem:[%s11010_s1 + $0x8] sm:$0xf] (!%p176_p9)  ;;  %v8443_v26 = vld [vmem:[%s11010_s1 + $0xc] sm:$0xf] (!%p176_p9) }
  0x11   : > { %s9328_s12 = smov (!%p176_p9), 106   ;;  %s9329_s13 = smov (!%p176_p9), 105   ;;  %vm11023_vm7 = vcmask (!%p176_p9), 1006592   ;;  %v8449_v31 = vld [vmem:[%s11010_s1 + $0x10] sm:$0xf] (!%p176_p9)  ;;  %vm11022_vm8 = vcmask (!%p176_p9), 998400  }
  0x12   : > { %s9330_s14 = smov (!%p176_p9), 104   ;;  %s9331_s20 = smov (!%p176_p9), 103   ;;  %v8455_v37 = vld [vmem:[%s11010_s1 + $0x14] sm:$0xf] (!%p176_p9)  ;;  %v8461_v41 = vld [vmem:[%s11010_s1 + $0x18] sm:$0xf] (!%p176_p9) }
  0x13   : > { %s9332_s22 = smov (!%p176_p9), 102   ;;  %s9333_s23 = smov (!%p176_p9), 101   ;;  %vm1363_vm9 = vcmask (!%p176_p9), 867328   ;;  %v8467_v46 = vld [vmem:[%s11010_s1 + $0x1c] sm:$0xf] (!%p176_p9)  ;;  %vm1527_vm10 = vcmask (!%p176_p9), 859136  }
  0x14   : > { %s9335_s29 = smov (!%p176_p9), 84   ;;  %s9336_s30 = smov (!%p176_p9), 83   ;;  %v9741_v52 = vld [vmem:[%s11010_s1 + $0x20] sm:$0xf] (!%p176_p9)  ;;  %v9759_v56 = vld [vmem:[%s11010_s1 + $0x24] sm:$0xf] (!%p176_p9) }
  0x15   : > { %s9446_s27 = scalar_select %p206_p10, %s9415_s19, 1  ;;  %vm1691_vm11 = vcmask 850944   ;;  %v9786_v61 = vld [vmem:[%s11010_s1 + $0x28] sm:$0xf]  ;;  %vm1855_vm12 = vcmask 842752   ;;  %vm2019_vm13 = vcmask 834560  }
  0x16   : > { %vm2183_vm14 = vcmask 826368   ;;  %vm2347_vm15 = vcmask 818176  }
  0x17   : > { %s8722_s28 = sshll.u32 %s9446_s27, 4 }
  0x18   : > { %s9452_s5 = scalar_lea.vmem %s11009_s0, %s8722_s28  ;;  %s9334_s28 = smov 100  }
  0x19   : > { %v9455_v1 = vld [vmem:[%s9452_s5] sm:$0xff]  ;;  %v9466_v3 = vld [vmem:[%s9452_s5 + $0x8] sm:$0xff] }
  0x1a   : > { %224 = vrot.lane.b32.xlu1 %v9455_v1, %s9322_s6  ;;  %v9462_v2 = vcombine.high %v9455_v1, %v9455_v1 }
  0x1c   : > { %226 = vrot.lane.b32.xlu0 %v9462_v2, %s9322_s6 }
  0x1e   : > { %539 = vrot.lane.b32.xlu1 %v9462_v2, %s9323_s7 }
  0x20   : > { %228 = vrot.lane.b32.xlu0 %v9466_v3, %s9322_s6  ;;  %s9337_s6 = smov 82  }
  0x22   : > { %537 = vrot.lane.b32.xlu1 %v9455_v1, %s9323_s7 }
  0x24   : > { %541 = vrot.lane.b32.xlu0 %v9466_v3, %s9323_s7  ;;  %s9338_s7 = smov 81  }
  0x26   : > { %705 = vrot.lane.b32.xlu1 %v9466_v3, %s9324_s8 }
  0x28   : > { %703 = vrot.lane.b32.xlu0 %v9462_v2, %s9324_s8 }
  0x2a   : > { %867 = vrot.lane.b32.xlu1 %v9462_v2, %s11016_s9 }
  0x2c   : > { %701 = vrot.lane.b32.xlu0 %v9455_v1, %s9324_s8  ;;  %s9339_s8 = smov 80  }
  0x2e   : > { %865 = vrot.lane.b32.xlu1 %v9455_v1, %s11016_s9 }
  0x30   : > { %869 = vrot.lane.b32.xlu0 %v9466_v3, %s11016_s9  ;;  %s11020_s9 = smov 40  }
  0x32   : > { %1033 = vrot.lane.b32.xlu1 %v9466_v3, %s11015_s10 }
  0x34   : > { %1031 = vrot.lane.b32.xlu0 %v9462_v2, %s11015_s10 }
  0x36   : > { %1195 = vrot.lane.b32.xlu1 %v9462_v2, %s11014_s11 }
  0x38   : > { %1029 = vrot.lane.b32.xlu0 %v9455_v1, %s11015_s10  ;;  %s11018_s10 = smov 57  }
  0x3a   : > { %1193 = vrot.lane.b32.xlu1 %v9455_v1, %s11014_s11 }
  0x3c   : > { %1197 = vrot.lane.b32.xlu0 %v9466_v3, %s11014_s11  ;;  %s11017_s11 = smov 59  }
  0x3e   : > { %1361 = vrot.lane.b32.xlu1 %v9466_v3, %s9328_s12 }
  0x40   : > { %1359 = vrot.lane.b32.xlu0 %v9462_v2, %s9328_s12 }
  0x42   : > { %1523 = vrot.lane.b32.xlu1 %v9462_v2, %s9329_s13 }
  0x44   : > { %1357 = vrot.lane.b32.xlu0 %v9455_v1, %s9328_s12  ;;  %s9340_s12 = smov 79  }
  0x46   : > { %1521 = vrot.lane.b32.xlu1 %v9455_v1, %s9329_s13 }
  0x48   : > { %1525 = vrot.lane.b32.xlu0 %v9466_v3, %s9329_s13  ;;  %s9341_s13 = smov 78  }
  0x4a   : > { %1689 = vrot.lane.b32.xlu1 %v9466_v3, %s9330_s14 }
  0x4c   : > { %1687 = vrot.lane.b32.xlu0 %v9462_v2, %s9330_s14 }
  0x4e   : > { %1851 = vrot.lane.b32.xlu1 %v9462_v2, %s9331_s20 }
  0x50   : > { %1685 = vrot.lane.b32.xlu0 %v9455_v1, %s9330_s14  ;;  %s9342_s14 = smov 62  }
  0x52   : > { %1849 = vrot.lane.b32.xlu1 %v9455_v1, %s9331_s20 }
  0x54   : > { %1853 = vrot.lane.b32.xlu0 %v9466_v3, %s9331_s20  ;;  %s9359_s20 = smov 15  }
  0x56   : > { %2017 = vrot.lane.b32.xlu1 %v9466_v3, %s9332_s22 }
  0x58   : > { %2015 = vrot.lane.b32.xlu0 %v9462_v2, %s9332_s22 }
  0x5a   : > { %2179 = vrot.lane.b32.xlu1 %v9462_v2, %s9333_s23 }
  0x5c   : > { %2013 = vrot.lane.b32.xlu0 %v9455_v1, %s9332_s22  ;;  %s9344_s22 = smov 60  }
  0x5e   : > { %2177 = vrot.lane.b32.xlu1 %v9455_v1, %s9333_s23 }
  0x60   : > { %2181 = vrot.lane.b32.xlu0 %v9466_v3, %s9333_s23  ;;  %s9343_s23 = smov 61  }
  0x62   : > { %2345 = vrot.lane.b32.xlu1 %v9466_v3, %s9334_s28 }
  0x64   : > { %2343 = vrot.lane.b32.xlu0 %v9462_v2, %s9334_s28 }
  0x66   : > { %2508 = vrot.lane.b32.xlu1 %v9462_v2, %s9335_s29 }
  0x68   : > { %2341 = vrot.lane.b32.xlu0 %v9455_v1, %s9334_s28  ;;  %s9346_s28 = smov 58  }
  0x6a   : > { %2506 = vrot.lane.b32.xlu1 %v9455_v1, %s9335_s29 }
  0x6c   : > { %2510 = vrot.lane.b32.xlu0 %v9466_v3, %s9335_s29 }
  0x6e   : > { %2677 = vrot.lane.b32.xlu1 %v9466_v3, %s9336_s30 }
  0x70   : > { %2675 = vrot.lane.b32.xlu0 %v9462_v2, %s9336_s30 }
  0x72   : > { %2842 = vrot.lane.b32.xlu1 %v9462_v2, %s9337_s6 }
  0x74   : > { %2673 = vrot.lane.b32.xlu0 %v9455_v1, %s9336_s30 }
  0x76   : > { %2840 = vrot.lane.b32.xlu1 %v9455_v1, %s9337_s6 }
  0x78   : > { %2844 = vrot.lane.b32.xlu0 %v9466_v3, %s9337_s6 }
  0x7a   : > { %3011 = vrot.lane.b32.xlu1 %v9466_v3, %s9338_s7 }
  0x7c   : > { %3009 = vrot.lane.b32.xlu0 %v9462_v2, %s9338_s7 }
  0x7e   : > { %3176 = vrot.lane.b32.xlu1 %v9462_v2, %s9339_s8 }
  0x80   : > { %3007 = vrot.lane.b32.xlu0 %v9455_v1, %s9338_s7 }
  0x82   : > { %3174 = vrot.lane.b32.xlu1 %v9455_v1, %s9339_s8 }
  0x84   : > { %3178 = vrot.lane.b32.xlu0 %v9466_v3, %s9339_s8 }
  0x86   : > { %3345 = vrot.lane.b32.xlu1 %v9466_v3, %s9340_s12 }
  0x88   : > { %3343 = vrot.lane.b32.xlu0 %v9462_v2, %s9340_s12 }
  0x8a   : > { %3510 = vrot.lane.b32.xlu1 %v9462_v2, %s9341_s13 }
  0x8c   : > { %v225_v4 = vpop.permute.xlu1 %224  ;;  %3341 = vrot.lane.b32.xlu0 %v9455_v1, %s9340_s12 }
  0x8e   : > { %3508 = vrot.lane.b32.xlu1 %v9455_v1, %s9341_s13  ;;  %v227_v5 = vpop.permute.xlu0 %226 }
  0x8f   : > { %v231_v11 = vsel %vm230_vm2, %v225_v4, %v227_v5 }
  0x90   : > { %v540_v6 = vpop.permute.xlu1 %539  ;;  %3512 = vrot.lane.b32.xlu0 %v9466_v3, %s9341_s13 }
  0x92   : > { %3679 = vrot.lane.b32.xlu1 %v9466_v3, %s9342_s14  ;;  %v229_v7 = vpop.permute.xlu0 %228 }
  0x93   : > { %8822 = vmatpush3.msk.msra.mxu1 %vm237_vm1, %v229_v7  ;;  %v232_v8 = vsel %vm230_vm2, %v227_v5, %v229_v7  ;;  %vm2514_vm2 = vcmask 687104  }
  0x94   : > { %v538_v10 = vpop.permute.xlu1 %537  ;;  %3677 = vrot.lane.b32.xlu0 %v9462_v2, %s9342_s14  ;;  %8427 = vmatprep.subr.msk.mxu0 %vm237_vm1, %v232_v8  ;;  %v9820_v8 = vld [vmem:[%s11010_s1 + $0x2c] sm:$0xf] }
  0x95   : > { %8428 = vmatpush1.msk.msra.mxu0 %vm237_vm1, %v231_v11  ;;  %8824 = vmatmul.mubr.msk.f32.vlgmr.msra.gmra.mrb[0].mxu1 %vm233_vm3, %v8426_v9  ;;  %v544_v17 = vsel %vm543_vm4, %v538_v10, %v540_v6 }
  0x96   : > { %3844 = vrot.lane.b32.xlu1 %v9462_v2, %s9343_s23  ;;  %8429 = vmatmul.mubr.msk.f32.vlgmr.msra.gmra.mrb[0].mxu0 %vm233_vm3, %v8426_v9  ;;  %v542_v12 = vpop.permute.xlu0 %541 }
  0x97   : > { %8432 = vmatprep.subr.msk.mxu0 %vm237_vm1, %v9462_v2  ;;  %8826 = vmatprep.subr.mxu1 %v9320_v0  ;;  %v545_v13 = vsel %vm543_vm4, %v540_v6, %v542_v12  ;;  %v9808_v6 = vcombine.high %v9466_v3, %v9466_v3  ;;  %vm2681_vm4 = vcmask 678912  }
  0x98   : > { %8433 = vmatpush1.msk.msra.mxu0 %vm237_vm1, %v9455_v1  ;;  %v706_v14 = vpop.permute.xlu1 %705  ;;  %3675 = vrot.lane.b32.xlu0 %v9455_v1, %s9342_s14 }
  0x99   : > { %8827 = vmatpush3.msk.msra.mxu1 %vm237_vm1, %v9466_v3  ;;  %8438 = vmatprep.subr.msk.mxu0 %vm237_vm1, %v545_v13 }
  0x9a   : > { %3842 = vrot.lane.b32.xlu1 %v9455_v1, %s9343_s23  ;;  %v704_v15 = vpop.permute.xlu0 %703  ;;  %8828 = vmatprep.mubr.msk.f32.mxu1 %vm9321_vm0, %v9320_v0 }
  0x9b   : > { %8831 = vmatprep.subr.mxu1 %v9320_v0  ;;  %458 = vmatprep.mubr.f32.mxu0 %v9320_v0  ;;  %v709_v19 = vsel %vm707_vm5, %v704_v15, %v706_v14 }
  0x9c   : > { %v868_v18 = vpop.permute.xlu1 %867  ;;  %3846 = vrot.lane.b32.xlu0 %v9466_v3, %s9343_s23  ;;  %8829 = vmatmul.mubr.msk.f32.vlgmr.msra.gmra.mrb[2].mxu1 %vm233_vm3, %v218_v16 }
  0x9d   : > { %8832 = vmatpush3.msk.msra.mxu1 %vm237_vm1, %v542_v12  ;;  %8833 = vmatprep.mubr.msk.f32.mxu1 %vm9321_vm0, %v9320_v0  ;;  %v9837_v12 = vld [vmem:[%s11010_s1 + $0x30] sm:$0xf] }
  0x9e   : > { %4013 = vrot.lane.b32.xlu1 %v9466_v3, %s9344_s22  ;;  %8434 = vmatmul.mubr.msk.f32.vlgmr.msra.gmra.mrb[0].mxu0 %vm233_vm3, %v218_v16  ;;  %v702_v20 = vpop.permute.xlu0 %701 }
  0x9f   : > { %8439 = vmatpush1.msk.msra.mxu0 %vm237_vm1, %v544_v17  ;;  %8836 = vmatprep.subr.mxu1 %v9320_v0  ;;  %v708_v24 = vsel %vm707_vm5, %v702_v20, %v704_v15  ;;  %v9864_v17 = vld [vmem:[%s11010_s1 + $0x34] sm:$0xf]  ;;  %vm2848_vm5 = vcmask 670720  }
  0xa0   : > { %v866_v21 = vpop.permute.xlu1 %865  ;;  %4011 = vrot.lane.b32.xlu0 %v9462_v2, %s9344_s22  ;;  %8444 = vmatprep.subr.msk.mxu0 %vm237_vm1, %v709_v19 }
  0xa1   : > { %619 = vmatprep.mubr.f32.mxu0 %v9320_v0  ;;  %8834 = vmatmul.mubr.msk.f32.vlgmr.msra.gmra.mrb[4].mxu1 %vm233_vm3, %v8437_v22  ;;  %v872_v32 = vsel %vm11024_vm6, %v866_v21, %v868_v18 }
  0xa2   : > { %4178 = vrot.lane.b32.xlu1 %v9462_v2, %s11017_s11  ;;  %v9613_v23 = vpop.permute.xlu0 %869  ;;  %8837 = vmatpush3.msk.msra.mxu1 %vm237_vm1, %v706_v14 }
  0xa3   : > { %8838 = vmatprep.mubr.msk.f32.mxu1 %vm9321_vm0, %v9320_v0  ;;  %8841 = vmatprep.subr.mxu1 %v9320_v0  ;;  %v9629_v27 = vsel %vm11024_vm6, %v868_v18, %v9613_v23  ;;  %vm11025_vm6 = vcmask 302080  }
  0xa4   : > { %v9620_v25 = vpop.permute.xlu1 %1033  ;;  %4009 = vrot.lane.b32.xlu0 %v9455_v1, %s9344_s22 }
  0xa5   : > { %8839 = vmatmul.mubr.msk.f32.vlgmr.msra.gmra.mrb[6].mxu1 %vm233_vm3, %v8443_v26 }
  0xa6   : > { %4176 = vrot.lane.b32.xlu1 %v9455_v1, %s11017_s11  ;;  %8440 = vmatmul.mubr.msk.f32.vlgmr.msra.gmra.mrb[0].mxu0 %vm233_vm3, %v8437_v22  ;;  %v1032_v28 = vpop.permute.xlu0 %1031 }
  0xa7   : > { %8445 = vmatpush1.msk.msra.mxu0 %vm237_vm1, %v708_v24  ;;  %783 = vmatprep.mubr.f32.mxu0 %v9320_v0  ;;  %v9659_v34 = vsel %vm11023_vm7, %v1032_v28, %v9620_v25 }
  0xa8   : > { %v1196_v29 = vpop.permute.xlu1 %1195  ;;  %4180 = vrot.lane.b32.xlu0 %v9466_v3, %s11017_s11  ;;  %8450 = vmatprep.subr.msk.mxu0 %vm237_vm1, %v9629_v27  ;;  %s11019_s11 = smov 56  }
  0xa9   : > { %8842 = vmatpush3.msk.msra.mxu1 %vm237_vm1, %v9613_v23  ;;  %8843 = vmatprep.mubr.msk.f32.mxu1 %vm9321_vm0, %v9320_v0 }
  0xaa   : > { %4347 = vrot.lane.b32.xlu1 %v9466_v3, %s9346_s28  ;;  %v1030_v30 = vpop.permute.xlu0 %1029  ;;  %8846 = vmatprep.subr.mxu1 %v9320_v0 }
  0xab   : > { %8844 = vmatmul.mubr.msk.f32.vlgmr.msra.gmra.mrb[8].mxu1 %vm233_vm3, %v8449_v31  ;;  %v1036_v39 = vsel %vm11023_vm7, %v1030_v30, %v1032_v28  ;;  %vm4184_vm7 = vcmask 482304  }
  0xac   : > { %v1194_v33 = vpop.permute.xlu1 %1193  ;;  %4345 = vrot.lane.b32.xlu0 %v9462_v2, %s9346_s28  ;;  %8847 = vmatpush3.msk.msra.mxu1 %vm237_vm1, %v9620_v25 }
  0xad   : > { %8848 = vmatprep.mubr.msk.f32.mxu1 %vm9321_vm0, %v9320_v0  ;;  %8851 = vmatprep.subr.mxu1 %v9320_v0  ;;  %v1200_v47 = vsel %vm11022_vm8, %v1194_v33, %v1196_v29 }
  0xae   : > { %4512 = vrot.lane.b32.xlu1 %v9462_v2, %s11018_s10  ;;  %8446 = vmatmul.mubr.msk.f32.vlgmr.msra.gmra.mrb[0].mxu0 %vm233_vm3, %v8443_v26  ;;  %v9667_v35 = vpop.permute.xlu0 %1197 }
  0xaf   : > { %8451 = vmatpush1.msk.msra.mxu0 %vm237_vm1, %v872_v32  ;;  %947 = vmatprep.mubr.f32.mxu0 %v9320_v0  ;;  %v9696_v42 = vsel %vm11022_vm8, %v1196_v29, %v9667_v35  ;;  %vm5186_vm8 = vcmask 310272  }
  0xb0   : > { %v1362_v36 = vpop.permute.xlu1 %1361  ;;  %4343 = vrot.lane.b32.xlu0 %v9455_v1, %s9346_s28  ;;  %8456 = vmatprep.subr.msk.mxu0 %vm237_vm1, %v9659_v34 }
  0xb1   : > { %8849 = vmatmul.mubr.msk.f32.vlgmr.msra.gmra.mrb[10].mxu1 %vm233_vm3, %v8455_v37 }
  0xb2   : > { %4510 = vrot.lane.b32.xlu1 %v9455_v1, %s11018_s10  ;;  %v1360_v38 = vpop.permute.xlu0 %1359  ;;  %8852 = vmatpush3.msk.msra.mxu1 %vm237_vm1, %v9667_v35 }
  0xb3   : > { %8853 = vmatprep.mubr.msk.f32.mxu1 %vm9321_vm0, %v9320_v0  ;;  %8856 = vmatprep.subr.mxu1 %v9320_v0  ;;  %v1365_v49 = vsel %vm1363_vm9, %v1360_v38, %v1362_v36 }
  0xb4   : > { %v9687_v40 = vpop.permute.xlu1 %1523  ;;  %4514 = vrot.lane.b32.xlu0 %v9466_v3, %s11018_s10  ;;  %s9352_s10 = smov 37  }
  0xb5   : > { %8854 = vmatmul.mubr.msk.f32.vlgmr.msra.gmra.mrb[12].mxu1 %vm233_vm3, %v8461_v41 }
  0xb6   : > { %4681 = vrot.lane.b32.xlu1 %v9466_v3, %s11019_s11  ;;  %8452 = vmatmul.mubr.msk.f32.vlgmr.msra.gmra.mrb[0].mxu0 %vm233_vm3, %v8449_v31  ;;  %v1358_v43 = vpop.permute.xlu0 %1357 }
  0xb7   : > { %8457 = vmatpush1.msk.msra.mxu0 %vm237_vm1, %v1036_v39  ;;  %1111 = vmatprep.mubr.f32.mxu0 %v9320_v0  ;;  %v1364_v54 = vsel %vm1363_vm9, %v1358_v43, %v1360_v38  ;;  %vm3015_vm9 = vcmask 662528  }
  0xb8   : > { %v1522_v44 = vpop.permute.xlu1 %1521  ;;  %4679 = vrot.lane.b32.xlu0 %v9462_v2, %s11019_s11  ;;  %8462 = vmatprep.subr.msk.mxu0 %vm237_vm1, %v9696_v42 }
  0xb9   : > { %8857 = vmatpush3.msk.msra.mxu1 %vm237_vm1, %v1362_v36  ;;  %8858 = vmatprep.mubr.msk.f32.mxu1 %vm9321_vm0, %v9320_v0  ;;  %v1528_v62 = vsel %vm1527_vm10, %v1522_v44, %v9687_v40 }
  0xba   : > { %4846 = vrot.lane.b32.xlu1 %v9462_v2, %s11020_s9  ;;  %v1526_v45 = vpop.permute.xlu0 %1525  ;;  %8861 = vmatprep.subr.mxu1 %v9320_v0 }
  0xbb   : > { %8859 = vmatmul.mubr.msk.f32.vlgmr.msra.gmra.mrb[14].mxu1 %vm233_vm3, %v8467_v46  ;;  %v1529_v57 = vsel %vm1527_vm10, %v9687_v40, %v1526_v45  ;;  %vm3182_vm10 = vcmask 654336  }
  0xbc   : > { %v1690_v48 = vpop.permute.xlu1 %1689  ;;  %4677 = vrot.lane.b32.xlu0 %v9455_v1, %s11019_s11  ;;  %8862 = vmatpush3.msk.msra.mxu1 %vm237_vm1, %v1526_v45  ;;  %s9350_s11 = smov 39  }
  0xbd   : > { %8863 = vmatprep.mubr.msk.f32.mxu1 %vm9321_vm0, %v9320_v0  ;;  %8866 = vmatprep.subr.mxu1 %v9320_v0 }
  0xbe   : > { %4844 = vrot.lane.b32.xlu1 %v9455_v1, %s11020_s9  ;;  %8458 = vmatmul.mubr.msk.f32.vlgmr.msra.gmra.mrb[0].mxu0 %vm233_vm3, %v8455_v37  ;;  %v9729_v50 = vpop.permute.xlu0 %1687 }
  0xbf   : > { %8463 = vmatpush1.msk.msra.mxu0 %vm237_vm1, %v1200_v47  ;;  %1275 = vmatprep.mubr.f32.mxu0 %v9320_v0  ;;  %v1693_v4 = vsel %vm1691_vm11, %v9729_v50, %v1690_v48 }
  0xc0   : > { %v9733_v51 = vpop.permute.xlu1 %1851  ;;  %4848 = vrot.lane.b32.xlu0 %v9466_v3, %s11020_s9  ;;  %8468 = vmatprep.subr.msk.mxu0 %vm237_vm1, %v1365_v49  ;;  %s11021_s9 = smov 38  }
  0xc1   : > { %8864 = vmatmul.mubr.msk.f32.vlgmr.msra.gmra.mrb[16].mxu1 %vm233_vm3, %v9741_v52 }
  0xc2   : > { %5015 = vrot.lane.b32.xlu1 %v9466_v3, %s9350_s11  ;;  %v1686_v53 = vpop.permute.xlu0 %1685  ;;  %8867 = vmatpush3.msk.msra.mxu1 %vm237_vm1, %v1690_v48 }
  0xc3   : > { %8868 = vmatprep.mubr.msk.f32.mxu1 %vm9321_vm0, %v9320_v0  ;;  %8871 = vmatprep.subr.mxu1 %v9320_v0  ;;  %v1692_v10 = vsel %vm1691_vm11, %v1686_v53, %v9729_v50  ;;  %vm3349_vm11 = vcmask 646144  }
  0xc4   : > { %v9752_v55 = vpop.permute.xlu1 %1849  ;;  %5013 = vrot.lane.b32.xlu0 %v9462_v2, %s9350_s11 }
  0xc5   : > { %8869 = vmatmul.mubr.msk.f32.vlgmr.msra.gmra.mrb[18].mxu1 %vm233_vm3, %v9759_v56  ;;  %v1856_v18 = vsel %vm1855_vm12, %v9752_v55, %v9733_v51 }
  0xc6   : > { %5180 = vrot.lane.b32.xlu1 %v9462_v2, %s11021_s9  ;;  %8464 = vmatmul.mubr.msk.f32.vlgmr.msra.gmra.mrb[0].mxu0 %vm233_vm3, %v8461_v41  ;;  %v1854_v58 = vpop.permute.xlu0 %1853 }
  0xc7   : > { %8469 = vmatpush1.msk.msra.mxu0 %vm237_vm1, %v1364_v54  ;;  %1439 = vmatprep.mubr.f32.mxu0 %v9320_v0  ;;  %v1857_v13 = vsel %vm1855_vm12, %v9733_v51, %v1854_v58  ;;  %v10003_v54 = vld [vmem:[%s11010_s1 + $0x38] sm:$0xf]  ;;  %vm3516_vm12 = vcmask 637952  }
  0xc8   : > { %v9770_v59 = vpop.permute.xlu1 %2017  ;;  %5011 = vrot.lane.b32.xlu0 %v9455_v1, %s9350_s11  ;;  %8474 = vmatprep.subr.msk.mxu0 %vm237_vm1, %v1529_v57 }
  0xc9   : > { %8872 = vmatpush3.msk.msra.mxu1 %vm237_vm1, %v1854_v58  ;;  %8873 = vmatprep.mubr.msk.f32.mxu1 %vm9321_vm0, %v9320_v0 }
  0xca   : > { %5178 = vrot.lane.b32.xlu1 %v9455_v1, %s11021_s9  ;;  %v9780_v60 = vpop.permute.xlu0 %2015  ;;  %8876 = vmatprep.subr.mxu1 %v9320_v0 }
  0xcb   : > { %8874 = vmatmul.mubr.msk.f32.vlgmr.msra.gmra.mrb[20].mxu1 %vm233_vm3, %v9786_v61  ;;  %v2021_v20 = vsel %vm2019_vm13, %v9780_v60, %v9770_v59 }
  0xcc   : > { %v9792_v63 = vpop.permute.xlu1 %2179  ;;  %5182 = vrot.lane.b32.xlu0 %v9466_v3, %s11021_s9  ;;  %8877 = vmatpush3.msk.msra.mxu1 %vm237_vm1, %v9770_v59  ;;  %s11029_s9 = smov 57  }
  0xcd   : > { %8878 = vmatprep.mubr.msk.f32.mxu1 %vm9321_vm0, %v9320_v0  ;;  %8881 = vmatprep.subr.mxu1 %v9320_v0 }
  0xce   : > { %5349 = vrot.lane.b32.xlu1 %v9466_v3, %s9352_s10  ;;  %8470 = vmatmul.mubr.msk.f32.vlgmr.msra.gmra.mrb[0].mxu0 %vm233_vm3, %v8467_v46  ;;  %v2014_v5 = vpop.permute.xlu0 %2013 }
  0xcf   : > { %8475 = vmatpush1.msk.msra.mxu0 %vm237_vm1, %v1528_v62  ;;  %1603 = vmatprep.mubr.f32.mxu0 %v9320_v0  ;;  %v2020_v26 = vsel %vm2019_vm13, %v2014_v5, %v9780_v60  ;;  %vm3683_vm13 = vcmask 506880  }
  0xd0   : > { %v9812_v7 = vpop.permute.xlu1 %2177  ;;  %5347 = vrot.lane.b32.xlu0 %v9462_v2, %s9352_s10  ;;  %8480 = vmatprep.subr.msk.mxu0 %vm237_vm1, %v1693_v4 }
  0xd1   : > { %8879 = vmatmul.mubr.msk.f32.vlgmr.msra.gmra.mrb[22].mxu1 %vm233_vm3, %v9820_v8  ;;  %v2184_v33 = vsel %vm2183_vm14, %v9812_v7, %v9792_v63 }
  0xd2   : > { %2512 = vrot.lane.b32.xlu1 %v9808_v6, %s9335_s29  ;;  %v2182_v9 = vpop.permute.xlu0 %2181  ;;  %8883 = vmatprep.mubr.msk.f32.mxu1 %vm9321_vm0, %v9320_v0  ;;  %s9353_s29 = smov 36  }
  0xd3   : > { %8882 = vmatpush3.msk.msra.mxu1 %vm237_vm1, %v2182_v9  ;;  %v2185_v29 = vsel %vm2183_vm14, %v9792_v63, %v2182_v9  ;;  %v10066_v9 = vld [vmem:[%s11010_s1 + $0x40] sm:$0xf]  ;;  %vm3850_vm14 = vcmask 498688  }
  0xd4   : > { %v2346_v11 = vpop.permute.xlu1 %2345  ;;  %5345 = vrot.lane.b32.xlu0 %v9455_v1, %s9352_s10  ;;  %8886 = vmatprep.subr.mxu1 %v9320_v0 }
  0xd5   : > { %8884 = vmatmul.mubr.msk.f32.vlgmr.msra.gmra.mrb[24].mxu1 %vm233_vm3, %v9837_v12 }
  0xd6   : > { %5514 = vrot.lane.b32.xlu1 %v9462_v2, %s9353_s29  ;;  %8476 = vmatmul.mubr.msk.f32.vlgmr.msra.gmra.mrb[0].mxu0 %vm233_vm3, %v9741_v52  ;;  %v9847_v14 = vpop.permute.xlu0 %2343 }
  0xd7   : > { %8481 = vmatpush1.msk.msra.mxu0 %vm237_vm1, %v1692_v10  ;;  %1767 = vmatprep.mubr.f32.mxu0 %v9320_v0  ;;  %v2349_v37 = vsel %vm2347_vm15, %v9847_v14, %v2346_v11 }
  0xd8   : > { %v9851_v15 = vpop.permute.xlu1 %2508  ;;  %2679 = vrot.lane.b32.xlu0 %v9808_v6, %s9336_s30  ;;  %8486 = vmatprep.subr.msk.mxu0 %vm237_vm1, %v1857_v13  ;;  %s9354_s30 = smov 35  }
  0xd9   : > { %8887 = vmatpush3.msk.msra.mxu1 %vm237_vm1, %v2346_v11  ;;  %8888 = vmatprep.mubr.msk.f32.mxu1 %vm9321_vm0, %v9320_v0 }
  0xda   : > { %5512 = vrot.lane.b32.xlu1 %v9455_v1, %s9353_s29  ;;  %v2342_v16 = vpop.permute.xlu0 %2341  ;;  %8891 = vmatprep.subr.mxu1 %v9320_v0 }
  0xdb   : > { %8889 = vmatmul.mubr.msk.f32.vlgmr.msra.gmra.mrb[26].mxu1 %vm233_vm3, %v9864_v17  ;;  %v2348_v41 = vsel %vm2347_vm15, %v2342_v16, %v9847_v14  ;;  %v10098_v16 = vld [vmem:[%s11010_s1 + $0x44] sm:$0xf]  ;;  %vm4017_vm15 = vcmask 490496  }
  0xdc   : > { %v9872_v19 = vpop.permute.xlu1 %2506  ;;  %5516 = vrot.lane.b32.xlu0 %v9466_v3, %s9353_s29  ;;  %8893 = vmatprep.mubr.msk.f32.mxu1 %vm9321_vm0, %v9320_v0 }
  0xdd   : > { %v2515_v48 = vsel %vm2514_vm2, %v9872_v19, %v9851_v15 }
  0xde   : > { %3013 = vrot.lane.b32.xlu1 %v9808_v6, %s9338_s7  ;;  %8482 = vmatmul.mubr.msk.f32.vlgmr.msra.gmra.mrb[0].mxu0 %vm233_vm3, %v9759_v56  ;;  %v9885_v21 = vpop.permute.xlu0 %2510  ;;  %s9356_s7 = smov 18  }
  0xdf   : > { %8487 = vmatpush1.msk.msra.mxu0 %vm237_vm1, %v1856_v18  ;;  %1931 = vmatprep.mubr.f32.mxu0 %v9320_v0  ;;  %v2516_v44 = vsel %vm2514_vm2, %v9851_v15, %v9885_v21 }
  0xe0   : > { %v9889_v22 = vpop.permute.xlu1 %2677  ;;  %2846 = vrot.lane.b32.xlu0 %v9808_v6, %s9337_s6  ;;  %8492 = vmatprep.subr.msk.mxu0 %vm237_vm1, %v2021_v20  ;;  %s9355_s6 = smov 34  }
  0xe2   : > { %5683 = vrot.lane.b32.xlu1 %v9466_v3, %s9354_s30  ;;  %v9896_v24 = vpop.permute.xlu0 %2675 }
  0xe3   : > { %v2683_v50 = vsel %vm2681_vm4, %v9896_v24, %v9889_v22 }
  0xe4   : > { %v9900_v28 = vpop.permute.xlu1 %2842  ;;  %5681 = vrot.lane.b32.xlu0 %v9462_v2, %s9354_s30 }
  0xe6   : > { %3180 = vrot.lane.b32.xlu1 %v9808_v6, %s9339_s8  ;;  %8488 = vmatmul.mubr.msk.f32.vlgmr.msra.gmra.mrb[0].mxu0 %vm233_vm3, %v9786_v61  ;;  %v2674_v30 = vpop.permute.xlu0 %2673  ;;  %s9357_s8 = smov 17   ;;  %v10034_v61 = vld [vmem:[%s11010_s1 + $0x3c] sm:$0xf] }
  0xe7   : > { %8493 = vmatpush1.msk.msra.mxu0 %vm237_vm1, %v2020_v26  ;;  %2095 = vmatprep.mubr.f32.mxu0 %v9320_v0  ;;  %v2682_v55 = vsel %vm2681_vm4, %v2674_v30, %v9896_v24 }
  0xe8   : > { %v9912_v31 = vpop.permute.xlu1 %2840  ;;  %5679 = vrot.lane.b32.xlu0 %v9455_v1, %s9354_s30  ;;  %8498 = vmatprep.subr.msk.mxu0 %vm237_vm1, %v2185_v29 }
  0xe9   : > { %v2849_v62 = vsel %vm2848_vm5, %v9912_v31, %v9900_v28 }
  0xea   : > { %5848 = vrot.lane.b32.xlu1 %v9462_v2, %s9355_s6  ;;  %v9919_v32 = vpop.permute.xlu0 %2844 }
  0xeb   : > { %v2850_v57 = vsel %vm2848_vm5, %v9900_v28, %v9919_v32  ;;  %v10130_v28 = vld [vmem:[%s11010_s1 + $0x48] sm:$0xf] }
  0xec   : > { %v9924_v36 = vpop.permute.xlu1 %3011  ;;  %3347 = vrot.lane.b32.xlu0 %v9808_v6, %s9340_s12  ;;  %s11032_s12 = smov 38  }
  0xee   : > { %5846 = vrot.lane.b32.xlu1 %v9455_v1, %s9355_s6  ;;  %8494 = vmatmul.mubr.msk.f32.vlgmr.msra.gmra.mrb[0].mxu0 %vm233_vm3, %v9820_v8  ;;  %v9934_v38 = vpop.permute.xlu0 %3009 }
  0xef   : > { %8499 = vmatpush1.msk.msra.mxu0 %vm237_vm1, %v2184_v33  ;;  %2259 = vmatprep.mubr.f32.mxu0 %v9320_v0  ;;  %v3017_v4 = vsel %vm3015_vm9, %v9934_v38, %v9924_v36 }
  0xf0   : > { %v9938_v39 = vpop.permute.xlu1 %3176  ;;  %5850 = vrot.lane.b32.xlu0 %v9466_v3, %s9355_s6  ;;  %8504 = vmatprep.subr.msk.mxu0 %vm237_vm1, %v2349_v37 }
  0xf2   : > { %3681 = vrot.lane.b32.xlu1 %v9808_v6, %s9342_s14  ;;  %v9945_v40 = vpop.permute.xlu0 %3007  ;;  %s11028_s14 = smov 59  }
  0xf3   : > { %v3016_v10 = vsel %vm3015_vm9, %v9945_v40, %v9934_v38 }
  0xf4   : > { %v9949_v43 = vpop.permute.xlu1 %3174  ;;  %3514 = vrot.lane.b32.xlu0 %v9808_v6, %s9341_s13  ;;  %s203_s13 = sand.u32 1, %s9310_s16  }
  0xf6   : > { %6017 = vrot.lane.b32.xlu1 %v9466_v3, %s9356_s7  ;;  %8500 = vmatmul.mubr.msk.f32.vlgmr.msra.gmra.mrb[0].mxu0 %vm233_vm3, %v9837_v12  ;;  %v9960_v45 = vpop.permute.xlu0 %3178 }
  0xf7   : > { %8505 = vmatpush1.msk.msra.mxu0 %vm237_vm1, %v2348_v41  ;;  %2423 = vmatprep.mubr.f32.mxu0 %v9320_v0  ;;  %v3184_v12 = vsel %vm3182_vm10, %v9938_v39, %v9960_v45 }
  0xf8   : > { %v9964_v46 = vpop.permute.xlu1 %3345  ;;  %6015 = vrot.lane.b32.xlu0 %v9462_v2, %s9356_s7  ;;  %8510 = vmatprep.subr.msk.mxu0 %vm237_vm1, %v2516_v44 }
  0xfa   : > { %3848 = vrot.lane.b32.xlu1 %v9808_v6, %s9343_s23  ;;  %v9971_v47 = vpop.permute.xlu0 %3343  ;;  %s9358_s23 = smov 16  }
  0xfb   : > { %v3351_v19 = vsel %vm3349_vm11, %v9971_v47, %v9964_v46 }
  0xfc   : > { %v9976_v49 = vpop.permute.xlu1 %3510  ;;  %6013 = vrot.lane.b32.xlu0 %v9455_v1, %s9356_s7 }
  0xfe   : > { %6182 = vrot.lane.b32.xlu1 %v9462_v2, %s9357_s8  ;;  %8506 = vmatmul.mubr.msk.f32.vlgmr.msra.gmra.mrb[0].mxu0 %vm233_vm3, %v9864_v17  ;;  %v9987_v51 = vpop.permute.xlu0 %3341  ;;  %v3183_v17 = vsel %vm3182_vm10, %v9949_v43, %v9938_v39  ;;  %v10162_v39 = vld [vmem:[%s11010_s1 + $0x4c] sm:$0xf] }
  0xff   : > { %8511 = vmatpush1.msk.msra.mxu0 %vm237_vm1, %v2515_v48  ;;  %2591 = vmatprep.mubr.f32.mxu0 %v9320_v0  ;;  %v3350_v29 = vsel %vm3349_vm11, %v9987_v51, %v9971_v47 }
 0x100   : > { %v9991_v52 = vpop.permute.xlu1 %3508  ;;  %4015 = vrot.lane.b32.xlu0 %v9808_v6, %s9344_s22  ;;  %8516 = vmatprep.subr.msk.mxu0 %vm237_vm1, %v2683_v50  ;;  %s9361_s22 = smov 13  }
 0x101   : > { %v3517_v40 = vsel %vm3516_vm12, %v9991_v52, %v9976_v49 }
 0x102   : > { %6180 = vrot.lane.b32.xlu1 %v9455_v1, %s9357_s8  ;;  %v9998_v53 = vpop.permute.xlu0 %3512 }
 0x103   : > { %v3518_v31 = vsel %vm3516_vm12, %v9976_v49, %v9998_v53  ;;  %v10194_v49 = vld [vmem:[%s11010_s1 + $0x50] sm:$0xf] }
 0x104   : > { %v10007_v56 = vpop.permute.xlu1 %3679  ;;  %6184 = vrot.lane.b32.xlu0 %v9466_v3, %s9357_s8 }
 0x106   : > { %4349 = vrot.lane.b32.xlu1 %v9808_v6, %s9346_s28  ;;  %8512 = vmatmul.mubr.msk.f32.vlgmr.msra.gmra.mrb[0].mxu0 %vm233_vm3, %v10003_v54  ;;  %v10018_v58 = vpop.permute.xlu0 %3677 }
 0x107   : > { %8517 = vmatpush1.msk.msra.mxu0 %vm237_vm1, %v2682_v55  ;;  %2758 = vmatprep.mubr.f32.mxu0 %v9320_v0  ;;  %v3685_v43 = vsel %vm3683_vm13, %v10018_v58, %v10007_v56 }
 0x108   : > { %v10022_v59 = vpop.permute.xlu1 %3844  ;;  %4182 = vrot.lane.b32.xlu0 %v9808_v6, %s11028_s14  ;;  %8522 = vmatprep.subr.msk.mxu0 %vm237_vm1, %v2850_v57  ;;  %s11030_s14 = smov 56  }
 0x10a   : > { %6351 = vrot.lane.b32.xlu1 %v9466_v3, %s9358_s23  ;;  %v10029_v60 = vpop.permute.xlu0 %3675 }
 0x10b   : > { %v3684_v50 = vsel %vm3683_vm13, %v10029_v60, %v10018_v58  ;;  %v10226_v58 = vld [vmem:[%s11010_s1 + $0x54] sm:$0xf] }
 0x10c   : > { %v10039_v63 = vpop.permute.xlu1 %3842  ;;  %6349 = vrot.lane.b32.xlu0 %v9462_v2, %s9358_s23 }
 0x10d   : > { %v3851_v60 = vsel %vm3850_vm14, %v10039_v63, %v10022_v59 }
 0x10e   : > { %4516 = vrot.lane.b32.xlu1 %v9808_v6, %s11029_s9  ;;  %8518 = vmatmul.mubr.msk.f32.vlgmr.msra.gmra.mrb[0].mxu0 %vm233_vm3, %v10034_v61  ;;  %v10050_v5 = vpop.permute.xlu0 %3846  ;;  %s11031_s9 = smov 40  }
 0x10f   : > { %8523 = vmatpush1.msk.msra.mxu0 %vm237_vm1, %v2849_v62  ;;  %2925 = vmatprep.mubr.f32.mxu0 %v9320_v0 }
 0x110   : > { %v10054_v7 = vpop.permute.xlu1 %4013  ;;  %6347 = vrot.lane.b32.xlu0 %v9455_v1, %s9358_s23  ;;  %8528 = vmatprep.subr.msk.mxu0 %vm237_vm1, %v3017_v4 }
 0x112   : > { %6516 = vrot.lane.b32.xlu1 %v9462_v2, %s9359_s20  ;;  %v10061_v8 = vpop.permute.xlu0 %4011 }
 0x113   : > { %v4019_v4 = vsel %vm4017_vm15, %v10061_v8, %v10054_v7 }
 0x114   : > { %v10071_v11 = vpop.permute.xlu1 %4178  ;;  %4683 = vrot.lane.b32.xlu0 %v9808_v6, %s11030_s14 }
 0x116   : > { %6514 = vrot.lane.b32.xlu1 %v9455_v1, %s9359_s20  ;;  %8524 = vmatmul.mubr.msk.f32.vlgmr.msra.gmra.mrb[0].mxu0 %vm233_vm3, %v10066_v9  ;;  %v10082_v13 = vpop.permute.xlu0 %4009 }
 0x117   : > { %8529 = vmatpush1.msk.msra.mxu0 %vm237_vm1, %v3016_v10  ;;  %3092 = vmatprep.mubr.f32.mxu0 %v9320_v0 }
 0x118   : > { %v10086_v14 = vpop.permute.xlu1 %4176  ;;  %6518 = vrot.lane.b32.xlu0 %v9466_v3, %s9359_s20  ;;  %8534 = vmatprep.subr.msk.mxu0 %vm237_vm1, %v3184_v12 }
 0x11a   : > { %5017 = vrot.lane.b32.xlu1 %v9808_v6, %s9350_s11  ;;  %v10093_v15 = vpop.permute.xlu0 %4180  ;;  %s9360_s11 = smov 14  }
 0x11c   : > { %v10103_v18 = vpop.permute.xlu1 %4347  ;;  %4850 = vrot.lane.b32.xlu0 %v9808_v6, %s11031_s9 }
 0x11e   : > { %6685 = vrot.lane.b32.xlu1 %v9466_v3, %s9360_s11  ;;  %8530 = vmatmul.mubr.msk.f32.vlgmr.msra.gmra.mrb[0].mxu0 %vm233_vm3, %v10098_v16  ;;  %v10114_v20 = vpop.permute.xlu0 %4345 }
 0x11f   : > { %8535 = vmatpush1.msk.msra.mxu0 %vm237_vm1, %v3183_v17  ;;  %3259 = vmatprep.mubr.f32.mxu0 %v9320_v0  ;;  %v10262_v17 = vld [vmem:[%s11010_s1 + $0x58] sm:$0xf] }
 0x120   : > { %v10118_v24 = vpop.permute.xlu1 %4512  ;;  %6683 = vrot.lane.b32.xlu0 %v9462_v2, %s9360_s11  ;;  %8540 = vmatprep.subr.msk.mxu0 %vm237_vm1, %v3351_v19  ;;  %v4018_v19 = vsel %vm4017_vm15, %v10082_v13, %v10061_v8 }
 0x122   : > { %5184 = vrot.lane.b32.xlu1 %v9808_v6, %s11032_s12  ;;  %v10125_v26 = vpop.permute.xlu0 %4343  ;;  %s9365_s12 = smov 119  }
 0x124   : > { %v10135_v30 = vpop.permute.xlu1 %4510  ;;  %6681 = vrot.lane.b32.xlu0 %v9455_v1, %s9360_s11 }
 0x126   : > { %6850 = vrot.lane.b32.xlu1 %v9462_v2, %s9361_s22  ;;  %8536 = vmatmul.mubr.msk.f32.vlgmr.msra.gmra.mrb[0].mxu0 %vm233_vm3, %v10130_v28  ;;  %v10146_v33 = vpop.permute.xlu0 %4514 }
 0x127   : > { %8541 = vmatpush1.msk.msra.mxu0 %vm237_vm1, %v3350_v29  ;;  %3426 = vmatprep.mubr.f32.mxu0 %v9320_v0 }
 0x128   : > { %v10150_v37 = vpop.permute.xlu1 %4681  ;;  %5351 = vrot.lane.b32.xlu0 %v9808_v6, %s9352_s10  ;;  %8546 = vmatprep.subr.msk.mxu0 %vm237_vm1, %v3518_v31  ;;  %s9362_s10 = smov 12   ;;  %v4186_v31 = vsel %vm4184_vm7, %v10071_v11, %v10093_v15 }
 0x12a   : > { %6848 = vrot.lane.b32.xlu1 %v9455_v1, %s9361_s22  ;;  %v10157_v38 = vpop.permute.xlu0 %4679 }
 0x12c   : > { %v10167_v41 = vpop.permute.xlu1 %4846  ;;  %6852 = vrot.lane.b32.xlu0 %v9466_v3, %s9361_s22 }
 0x12e   : > { %5685 = vrot.lane.b32.xlu1 %v9808_v6, %s9354_s30  ;;  %8542 = vmatmul.mubr.msk.f32.vlgmr.msra.gmra.mrb[0].mxu0 %vm233_vm3, %v10162_v39  ;;  %v10178_v44 = vpop.permute.xlu0 %4677 }
 0x12f   : > { %8547 = vmatpush1.msk.msra.mxu0 %vm237_vm1, %v3517_v40  ;;  %3593 = vmatprep.mubr.f32.mxu0 %v9320_v0 }
 0x130   : > { %v10182_v47 = vpop.permute.xlu1 %4844  ;;  %5518 = vrot.lane.b32.xlu0 %v9808_v6, %s9353_s29  ;;  %8552 = vmatprep.subr.msk.mxu0 %vm237_vm1, %v3685_v43  ;;  %s11033_s29 = smov 124  }
 0x132   : > { %7019 = vrot.lane.b32.xlu1 %v9466_v3, %s9362_s10  ;;  %v10189_v48 = vpop.permute.xlu0 %4848  ;;  %v3852_v3 = vsel %vm3850_vm14, %v10022_v59, %v10050_v5 }
 0x134   : > { %v10199_v51 = vpop.permute.xlu1 %5015  ;;  %7017 = vrot.lane.b32.xlu0 %v9462_v2, %s9362_s10 }
 0x136   : > { %5852 = vrot.lane.b32.xlu1 %v9808_v6, %s9355_s6  ;;  %8548 = vmatmul.mubr.msk.f32.vlgmr.msra.gmra.mrb[0].mxu0 %vm233_vm3, %v10194_v49  ;;  %v10210_v52 = vpop.permute.xlu0 %5013  ;;  %s9163_s6 = smul.u32 12, %s9446_s27 }
 0x137   : > { %8553 = vmatpush1.msk.msra.mxu0 %vm237_vm1, %v3684_v50  ;;  %3760 = vmatprep.mubr.f32.mxu0 %v9320_v0  ;;  %v10301_v50 = vld [vmem:[%s11010_s1 + $0x5c] sm:$0xf] }
 0x138   : > { %v10214_v55 = vpop.permute.xlu1 %5180  ;;  %7015 = vrot.lane.b32.xlu0 %v9455_v1, %s9362_s10  ;;  %8558 = vmatprep.subr.msk.mxu0 %vm237_vm1, %v3852_v3  ;;  %s215_s14 = scalar_lea.vmem %s11012_s3, %s9163_s6 }
 0x13a   : > { %7182 = vrot.lane.b32.xlu1 %v9808_v6, %s11033_s29  ;;  %v10221_v57 = vpop.permute.xlu0 %5011 }
 0x13c   : > { %v5179_v62 = vpop.permute.xlu1 %5178  ;;  %6019 = vrot.lane.b32.xlu0 %v9808_v6, %s9356_s7  ;;  %s11034_s7 = smov 123  }
 0x13d   : > { %v10235_v1 = vsel %vm5186_vm8, %v5179_v62, %v10214_v55  ;;  %v4185_v62 = vsel %vm4184_vm7, %v10086_v14, %v10071_v11 }
 0x13e   : > { %6353 = vrot.lane.b32.xlu1 %v9808_v6, %s9358_s23  ;;  %8554 = vmatmul.mubr.msk.f32.vlgmr.msra.gmra.mrb[0].mxu0 %vm233_vm3, %v10226_v58  ;;  %v10244_v10 = vpop.permute.xlu0 %5182  ;;  %s9366_s23 = smov 118  }
 0x13f   : > { %8559 = vmatpush1.msk.msra.mxu0 %vm237_vm1, %v3851_v60  ;;  %3927 = vmatprep.mubr.f32.mxu0 %v9320_v0 }
 0x140   : > { %8564 = vmatprep.subr.msk.mxu0 %vm237_vm1, %v4019_v4  ;;  %v10249_v59 = vpop.permute.xlu1 %5349  ;;  %6186 = vrot.lane.b32.xlu0 %v9808_v6, %s9357_s8  ;;  %s11035_s8 = smov 122   ;;  %v10330_v4 = vld [vmem:[%s9452_s5 + $0x8] sm:$0xff] }
 0x142   : > { %6520 = vrot.lane.b32.xlu1 %v9808_v6, %s9359_s20  ;;  %v10255_v63 = vpop.permute.xlu0 %5347  ;;  %s9164_s20 = smul.u32 192, %s9415_s19  ;;  %s9368_s19 = smov [#allocation2]  }
 0x143   : > { %s9260_s30 = sshll.u32 %s9368_s19, 4  ;;  %s9261_s30 = int_to_ptr.vmem [resolvable:$false] %s9260_s30 }
 0x144   : > { %v2513_v12 = vpop.permute.xlu1 %2512  ;;  %7338 = vrot.lane.b32.xlu0 %v9808_v6, %s11034_s7  ;;  %s10965_s9 = scalar_lea.hbm %s11013_s4, %s9164_s20 }
 0x145   : > { %v2517_v29 = vsel %vm2514_vm2, %v9885_v21, %v2513_v12  ;;  %vm5520_vm2 = vcmask 293888  }
 0x146   : > { %7494 = vrot.lane.b32.xlu1 %v9808_v6, %s11035_s8  ;;  %8892 = vmatpush3.msk.msra.mxu1 %vm237_vm1, %v2517_v29  ;;  %v5346_v40 = vpop.permute.xlu0 %5345  ;;  %s9162_s8 = smul.u32 12, %s203_s13 }
 0x147   : > { %8560 = vmatmul.mubr.msk.f32.vlgmr.msra.gmra.mrb[0].mxu0 %vm233_vm3, %v10262_v17  ;;  %v10279_v43 = vsel %vm11025_vm6, %v5346_v40, %v10255_v63  ;;  %8896 = vmatprep.subr.mxu1 %v9320_v0  ;;  %vm4351_vm6 = vcmask 474112  }
 0x148   : > { %8565 = vmatpush1.msk.msra.mxu0 %vm237_vm1, %v4018_v19  ;;  %v10283_v21 = vpop.permute.xlu1 %5514  ;;  %8894 = vmatmul.mubr.msk.f32.vlgmr.msra.gmra.mrb[28].mxu1 %vm233_vm3, %v10003_v54  ;;  %v10344_v19 = vld [vmem:[%s11010_s1 + $0x60] sm:$0xf]  ;;  %s205_s27 = scalar_lea.vmem [#allocation2], %s9162_s8 }
 0x149   : > { %8570 = vmatprep.subr.msk.mxu0 %vm237_vm1, %v4186_v31  ;;  %6687 = vrot.lane.b32.xlu0 %v9808_v6, %s9360_s11  ;;  %s9363_s11 = smov 121   ;;  %s8348_s28 = sshll.u32 %s205_s27, 4  ;;  %s10967_s28 = int_to_ptr.vmem [resolvable:$true] %s8348_s28 }
 0x14a   : > { %v2680_v8 = vpop.permute.xlu0 %2679  ;;  %4094 = vmatprep.mubr.f32.mxu0 %v9320_v0  ;;  %8898 = vmatprep.mubr.msk.f32.mxu1 %vm9321_vm0, %v9320_v0  ;;  %s9256_s5 = scalar_lea.vmem %s10967_s28, 192  ;;  %p9263_p0 = scmp.lt.s32.totalorder %s10967_s28, %s9261_s30 }
 0x14b   : > { %v2684_v13 = vsel %vm2681_vm4, %v9889_v22, %v2680_v8  ;;  %7021 = vrot.lane.b32.xlu1 %v9808_v6, %s9362_s10  ;;  %v4353_v22 = vsel %vm4351_vm6, %v10114_v20, %v10103_v18  ;;  %vm4518_vm4 = vcmask 465920   ;;  %s8334_s10 = scalar_lea.sflag [#allocation3], %s203_s13  ;;  %p9257_p11 = scmp.ne.s32.totalorder %s10967_s28, %s9256_s5 }
 0x14c   : > { %v5513_v54 = vpop.permute.xlu1 %5512  ;;  %8897 = vmatpush3.msk.msra.mxu1 %vm237_vm1, %v2684_v13  ;;  %v4519_v8 = vsel %vm4518_vm4, %v10135_v30, %v10118_v24  ;;  %v10422_v30 = vld [vmem:[%s11010_s1 + $0x68] sm:$0xf] }
 0x14d   : > { %v10305_v3 = vsel %vm5520_vm2, %v5513_v54, %v10283_v21  ;;  %6854 = vrot.lane.b32.xlu0 %v9808_v6, %s9361_s22  ;;  %8899 = vmatmul.mubr.msk.f32.vlgmr.msra.gmra.mrb[30].mxu1 %vm233_vm3, %v10034_v61  ;;  %s9364_s22 = smov 120   ;;  %p9258_p12 = pnand %p9257_p11, %p9432_p5 }
 0x14e   : > { %v10314_v60 = vpop.permute.xlu0 %5516  ;;  %8901 = vmatprep.subr.mxu1 %v9320_v0  ;;  %8903 = vmatprep.mubr.msk.f32.mxu1 %vm9321_vm0, %v9320_v0 }
 0x14f   : > { %8566 = vmatmul.mubr.msk.f32.vlgmr.msra.gmra.mrb[0].mxu0 %vm233_vm3, %v10301_v50  ;;  %7654 = vrot.lane.b32.xlu1 %v9808_v6, %s9363_s11  ;;  %p9259_p13 = pneg %p9258_p12 }
 0x150   : > { %8571 = vmatpush1.msk.msra.mxu0 %vm237_vm1, %v4185_v62  ;;  %v3014_v61 = vpop.permute.xlu1 %3013  ;;  %4261 = vmatprep.mubr.f32.mxu0 %v9320_v0 }
 0x151   : > { %8576 = vmatprep.subr.msk.mxu0 %vm237_vm1, %v4353_v22  ;;  %7652 = vrot.lane.b32.xlu0 %v10330_v4, %s9363_s11  ;;  %v3018_v29 = vsel %vm3015_vm9, %v9924_v36, %v3014_v61  ;;  %v4352_v36 = vsel %vm4351_vm6, %v10125_v26, %v10114_v20  ;;  %vm4852_vm9 = vcmask 326656  }
 0x152   : > { %v2847_v11 = vpop.permute.xlu0 %2846  ;;  %v4854_v61 = vsel %vm4852_vm9, %v10167_v41, %v10189_v48 }
 0x153   : > { %v2851_v14 = vsel %vm2848_vm5, %v9919_v32, %v2847_v11  ;;  %7816 = vrot.lane.b32.xlu1 %v10330_v4, %s9364_s22  ;;  %v4520_v32 = vsel %vm4518_vm4, %v10118_v24, %v10146_v33  ;;  %vm4685_vm5 = vcmask 457728  }
 0x154   : > { %v10338_v12 = vpop.permute.xlu1 %5683  ;;  %8902 = vmatpush3.msk.msra.mxu1 %vm237_vm1, %v2851_v14  ;;  %v10456_v14 = vld [vmem:[%s11010_s1 + $0x6c] sm:$0xf] }
 0x155   : > { %8906 = vmatprep.subr.mxu1 %v9320_v0  ;;  %8904 = vmatmul.mubr.msk.f32.vlgmr.msra.gmra.mrb[32].mxu1 %vm233_vm3, %v10066_v9 }
 0x156   : > { %8907 = vmatpush3.msk.msra.mxu1 %vm237_vm1, %v3018_v29  ;;  %v10355_v31 = vpop.permute.xlu0 %5681  ;;  %8908 = vmatprep.mubr.msk.f32.mxu1 %vm9321_vm0, %v9320_v0  ;;  %v4853_v29 = vsel %vm4852_vm9, %v10182_v47, %v10167_v41 }
 0x157   : > { %8572 = vmatmul.mubr.msk.f32.vlgmr.msra.gmra.mrb[0].mxu0 %vm233_vm3, %v10344_v19  ;;  %8911 = vmatprep.subr.mxu1 %v9320_v0 }
 0x158   : > { %8577 = vmatpush1.msk.msra.mxu0 %vm237_vm1, %v4352_v36  ;;  %v3181_v9 = vpop.permute.xlu1 %3180  ;;  %4428 = vmatprep.mubr.f32.mxu0 %v9320_v0  ;;  %v8599_v36 = vld [vmem:[%s11010_s1 + $0x74] sm:$0xf] }
 0x159   : > { %8582 = vmatprep.subr.msk.mxu0 %vm237_vm1, %v4520_v32  ;;  %v3185_v40 = vsel %vm3182_vm10, %v9960_v45, %v3181_v9  ;;  %8909 = vmatmul.mubr.msk.f32.vlgmr.msra.gmra.mrb[34].mxu1 %vm233_vm3, %v10098_v16  ;;  %v10385_v45 = vld [vmem:[%s11010_s1 + $0x64] sm:$0xf]  ;;  %vm5019_vm10 = vcmask 318464  }
 0x15a   : > { %8912 = vmatpush3.msk.msra.mxu1 %vm237_vm1, %v3185_v40  ;;  %v10373_v20 = vpop.permute.xlu0 %5679  ;;  %8913 = vmatprep.mubr.msk.f32.mxu1 %vm9321_vm0, %v9320_v0 }
 0x15b   : > { %8916 = vmatprep.subr.mxu1 %v9320_v0  ;;  %7650 = vrot.lane.b32.xlu0 %v9462_v2, %s9363_s11 }
 0x15c   : > { %v10380_v26 = vpop.permute.xlu1 %5848  ;;  %7814 = vrot.lane.b32.xlu1 %v9462_v2, %s9364_s22 }
 0x15d   : > { %8914 = vmatmul.mubr.msk.f32.vlgmr.msra.gmra.mrb[36].mxu1 %vm233_vm3, %v10130_v28  ;;  %v4687_v28 = vsel %vm4685_vm5, %v10157_v38, %v10150_v37 }
 0x15e   : > { %v3348_v16 = vpop.permute.xlu0 %3347  ;;  %8918 = vmatprep.mubr.msk.f32.mxu1 %vm9321_vm0, %v9320_v0 }
 0x15f   : > { %8578 = vmatmul.mubr.msk.f32.vlgmr.msra.gmra.mrb[0].mxu0 %vm233_vm3, %v10385_v45  ;;  %v3352_v13 = vsel %vm3349_vm11, %v9964_v46, %v3348_v16  ;;  %7818 = vrot.lane.b32.xlu0 %v9808_v6, %s9364_s22  ;;  %v5522_v16 = vsel %vm5520_vm2, %v10283_v21, %v10314_v60  ;;  %vm5854_vm11 = vcmask 277504  }
 0x160   : > { %8583 = vmatpush1.msk.msra.mxu0 %vm237_vm1, %v4519_v8  ;;  %v10406_v54 = vpop.permute.xlu1 %5846  ;;  %8917 = vmatpush3.msk.msra.mxu1 %vm237_vm1, %v3352_v13 }
 0x161   : > { %8588 = vmatprep.subr.msk.mxu0 %vm237_vm1, %v4687_v28  ;;  %4595 = vmatprep.mubr.f32.mxu0 %v9320_v0 }
 0x162   : > { %v10411_v24 = vpop.permute.xlu0 %5850  ;;  %8919 = vmatmul.mubr.msk.f32.vlgmr.msra.gmra.mrb[38].mxu1 %vm233_vm3, %v10162_v39  ;;  %8921 = vmatprep.subr.mxu1 %v9320_v0  ;;  %v4686_v39 = vsel %vm4685_vm5, %v10178_v44, %v10157_v38 }
 0x163   : > { %7980 = vrot.lane.b32.xlu0 %v10330_v4, %s9365_s12  ;;  %8923 = vmatprep.mubr.msk.f32.mxu1 %vm9321_vm0, %v9320_v0 }
 0x164   : > { %v3682_v46 = vpop.permute.xlu1 %3681  ;;  %7982 = vrot.lane.b32.xlu1 %v9808_v6, %s9365_s12 }
 0x165   : > { %v3686_v38 = vsel %vm3683_vm13, %v10007_v56, %v3682_v46  ;;  %vm6188_vm13 = vcmask 138240  }
 0x166   : > { %v3515_v22 = vpop.permute.xlu0 %3514 }
 0x167   : > { %8584 = vmatmul.mubr.msk.f32.vlgmr.msra.gmra.mrb[0].mxu0 %vm233_vm3, %v10422_v30  ;;  %v3519_v62 = vsel %vm3516_vm12, %v9998_v53, %v3515_v22  ;;  %7978 = vrot.lane.b32.xlu0 %v9462_v2, %s9365_s12  ;;  %vm6021_vm12 = vcmask 146432   ;;  %s9262_s12 = scalar_lea.vmem %s9261_s30, 384 }
 0x168   : > { %8589 = vmatpush1.msk.msra.mxu0 %vm237_vm1, %v4686_v39  ;;  %v10437_v11 = vpop.permute.xlu1 %6017  ;;  %8922 = vmatpush3.msk.msra.mxu1 %vm237_vm1, %v3519_v62  ;;  %v10612_v39 = vld [vmem:[%s11010_s1 + $0x80] sm:$0xf]  ;;  %p9264_p1 = scmp.lt.s32.totalorder %s9262_s12, %s9256_s5 }
 0x169   : > { %8594 = vmatprep.subr.msk.mxu0 %vm237_vm1, %v4854_v61  ;;  %8926 = vmatprep.subr.mxu1 %v9320_v0 }
 0x16a   : > { %8924 = vmatmul.mubr.msk.f32.vlgmr.msra.gmra.mrb[40].mxu1 %vm233_vm3, %v10194_v49  ;;  %v10446_v53 = vpop.permute.xlu0 %6015  ;;  %4762 = vmatprep.mubr.f32.mxu0 %v9320_v0  ;;  %p9265_p2 = por %p9264_p1, %p9263_p0 }
 0x16b   : > { %8927 = vmatpush3.msk.msra.mxu1 %vm237_vm1, %v3686_v38  ;;  %8928 = vmatprep.mubr.msk.f32.mxu1 %vm9321_vm0, %v9320_v0  ;;  %v381_v38 = vpop.f32.mrb[0].mxu1 }
 0x16c   : > { %v3849_v44 = vpop.permute.xlu1 %3848  ;;  %8931 = vmatprep.subr.mxu1 %v9320_v0  ;;  %8146 = vrot.lane.b32.xlu0 %v9808_v6, %s9366_s23  ;;  %v5021_v6 = vsel %vm5019_vm10, %v10210_v52, %v10199_v51  ;;  %p9266_p3 = pnand %p9265_p2, %p9259_p13 }
 0x16d   : > { %v3853_v56 = vsel %vm3850_vm14, %v10050_v5, %v3849_v44  ;;  %8144 = vrot.lane.b32.xlu1 %v10330_v4, %s9366_s23  ;;  %v10496_v4 = vld [vmem:[%s11010_s1 + $0x70] sm:$0xf]  ;;  %vm6355_vm14 = vcmask 130048  }
 0x16e   : > { %8929 = vmatmul.mubr.msk.f32.vlgmr.msra.gmra.mrb[42].mxu1 %vm233_vm3, %v10226_v58  ;;  %v10464_v49 = vpop.permute.xlu0 %6013 }
 0x16f   : > { %8932 = vmatpush3.msk.msra.mxu1 %vm237_vm1, %v3853_v56  ;;  %8590 = vmatmul.mubr.msk.f32.vlgmr.msra.gmra.mrb[0].mxu0 %vm233_vm3, %v10456_v14 }
 0x170   : > { %8595 = vmatpush1.msk.msra.mxu0 %vm237_vm1, %v4853_v29  ;;  %v10476_v5 = vpop.permute.xlu1 %6182  ;;  %8933 = vmatprep.mubr.msk.f32.mxu1 %vm9321_vm0, %v9320_v0 }
 0x171   : > { %8600 = vmatprep.subr.msk.mxu0 %vm237_vm1, %v5021_v6  ;;  %8936 = vmatprep.subr.mxu1 %v9320_v0 }
 0x172   : > { %v4016_v41 = vpop.permute.xlu0 %4015  ;;  %8934 = vmatmul.mubr.msk.f32.vlgmr.msra.gmra.mrb[44].mxu1 %vm233_vm3, %v10262_v17  ;;  %4929 = vmatprep.mubr.f32.mxu0 %v9320_v0 }
 0x173   : > { %v4020_v47 = vsel %vm4017_vm15, %v10054_v7, %v4016_v41  ;;  %8938 = vmatprep.mubr.msk.f32.mxu1 %vm9321_vm0, %v9320_v0  ;;  %8142 = vrot.lane.b32.xlu1 %v9462_v2, %s9366_s23  ;;  %v5020_v2 = vsel %vm5019_vm10, %v10221_v57, %v10210_v52  ;;  %v5188_v7 = vsel %vm5186_vm8, %v10214_v55, %v10244_v10  ;;  %v9367_v41 = vmov 0  }
 0x174   : > { %v10490_v58 = vpop.permute.xlu1 %6180  ;;  %8937 = vmatpush3.msk.msra.mxu1 %vm237_vm1, %v4020_v47  ;;  %9252 = vset.pattern.permute.xlu0 %v9367_v41  ;;  %vm6522_vm15 = vcmask 121856  }
 0x175   : > { %8941 = vmatprep.subr.mxu1 %v9320_v0 }
 0x176   : > { %v10499_v17 = vpop.permute.xlu0 %6184  ;;  %8939 = vmatmul.mubr.msk.f32.vlgmr.msra.gmra.mrb[46].mxu1 %vm233_vm3, %v10301_v50 }
 0x177   : > { %8596 = vmatmul.mubr.msk.f32.vlgmr.msra.gmra.mrb[0].mxu0 %vm233_vm3, %v10496_v4  ;;  %8943 = vmatprep.mubr.msk.f32.mxu1 %vm9321_vm0, %v9320_v0 }
 0x178   : > { %8601 = vmatpush1.msk.msra.mxu0 %vm237_vm1, %v5020_v2  ;;  %v4350_v32 = vpop.permute.xlu1 %4349  ;;  %5096 = vmatprep.mubr.f32.mxu0 %v9320_v0 }
 0x179   : > { %8606 = vmatprep.subr.msk.mxu0 %vm237_vm1, %v5188_v7  ;;  %v4354_v55 = vsel %vm4351_vm6, %v10103_v18, %v4350_v32  ;;  %vm5687_vm6 = vcmask 285696   ;;  %v8623_v7 = vld [vmem:[%s11010_s1 + $0x84] sm:$0xf] }
 0x17a   : > { %v4183_v50 = vpop.permute.xlu0 %4182  ;;  %v5689_v46 = vsel %vm5687_vm6, %v10355_v31, %v10338_v12  ;;  %v5688_v61 = vsel %vm5687_vm6, %v10373_v20, %v10355_v31  ;;  %v8304_v31 = vld [vmem:[%s11011_s2] sm:$0xf] }
 0x17b   : > { %v4187_v52 = vsel %vm4184_vm7, %v10093_v15, %v4183_v50  ;;  %vm11036_vm7 = vcmask 302080   ;;  %8307 = vperm.xlu0 %9252, %v8304_v31  }
 0x17c   : > { %v10518_v57 = vpop.permute.xlu1 %6351  ;;  %8942 = vmatpush3.msk.msra.mxu1 %vm237_vm1, %v4187_v52  ;;  %v5355_v15 = vsel %vm11036_vm7, %v10255_v63, %v10249_v59  ;;  %v8605_v63 = vld [vmem:[%s11010_s1 + $0x78] sm:$0xf] }
 0x17d   : > { %8946 = vmatprep.subr.mxu1 %v9320_v0  ;;  %8944 = vmatmul.mubr.msk.f32.vlgmr.msra.gmra.mrb[48].mxu1 %vm233_vm3, %v10344_v19 }
 0x17e   : > { %8947 = vmatpush3.msk.msra.mxu1 %vm237_vm1, %v4354_v55  ;;  %v10530_v9 = vpop.permute.xlu0 %6349  ;;  %8948 = vmatprep.mubr.msk.f32.mxu1 %vm9321_vm0, %v9320_v0 }
 0x17f   : > { %8602 = vmatmul.mubr.msk.f32.vlgmr.msra.gmra.mrb[0].mxu0 %vm233_vm3, %v8599_v36  ;;  %8951 = vmatprep.subr.mxu1 %v9320_v0 }
 0x180   : > { %8607 = vmatpush1.msk.msra.mxu0 %vm237_vm1, %v10235_v1  ;;  %v4517_v18 = vpop.permute.xlu1 %4516  ;;  %5263 = vmatprep.mubr.f32.mxu0 %v9320_v0 }
 0x181   : > { %8612 = vmatprep.subr.msk.mxu0 %vm237_vm1, %v5355_v15  ;;  %v4521_v19 = vsel %vm4518_vm4, %v10146_v33, %v4517_v18  ;;  %8949 = vmatmul.mubr.msk.f32.vlgmr.msra.gmra.mrb[50].mxu1 %vm233_vm3, %v10385_v45  ;;  %v5855_v15 = vsel %vm5854_vm11, %v10406_v54, %v10380_v26  ;;  %vm6856_vm4 = vcmask 105472  }
 0x182   : > { %8952 = vmatpush3.msk.msra.mxu1 %vm237_vm1, %v4521_v19  ;;  %v10548_v40 = vpop.permute.xlu0 %6347  ;;  %8953 = vmatprep.mubr.msk.f32.mxu1 %vm9321_vm0, %v9320_v0  ;;  %v6023_v19 = vsel %vm6021_vm12, %v10446_v53, %v10437_v11 }
 0x183   : > { %8956 = vmatprep.subr.mxu1 %v9320_v0 }
 0x184   : > { %v10553_v1 = vpop.permute.xlu1 %6516 }
 0x185   : > { %8954 = vmatmul.mubr.msk.f32.vlgmr.msra.gmra.mrb[52].mxu1 %vm233_vm3, %v10422_v30 }
 0x186   : > { %v4684_v33 = vpop.permute.xlu0 %4683  ;;  %8958 = vmatprep.mubr.msk.f32.mxu1 %vm9321_vm0, %v9320_v0 }
 0x187   : > { %8608 = vmatmul.mubr.msk.f32.vlgmr.msra.gmra.mrb[0].mxu0 %vm233_vm3, %v8605_v63  ;;  %v4688_v45 = vsel %vm4685_vm5, %v10150_v37, %v4684_v33  ;;  %vm7023_vm5 = vcmask 97280  }
 0x188   : > { %8613 = vmatpush1.msk.msra.mxu0 %vm237_vm1, %v10279_v43  ;;  %v10570_v8 = vpop.permute.xlu1 %6514  ;;  %8957 = vmatpush3.msk.msra.mxu1 %vm237_vm1, %v4688_v45  ;;  %v8611_v43 = vld [vmem:[%s11010_s1 + $0x7c] sm:$0xf] }
 0x189   : > { %8618 = vmatprep.subr.msk.mxu0 %vm237_vm1, %v5522_v16  ;;  %8959 = vmatmul.mubr.msk.f32.vlgmr.msra.gmra.mrb[54].mxu1 %vm233_vm3, %v10456_v14  ;;  %v8825_v14 = vpop.f32.mrb[1].mxu1 }
 0x18a   : > { %v10576_v13 = vpop.permute.xlu0 %6518  ;;  %5430 = vmatprep.mubr.f32.mxu0 %v9320_v0  ;;  %8961 = vmatprep.subr.mxu1 %v9320_v0  ;;  %v531_v20 = vpop.f32.mrb[2].mxu1 }
 0x18b   : > { %8963 = vmatprep.mubr.msk.f32.mxu1 %vm9321_vm0, %v9320_v0  ;;  %v532_v29 = vadd.f32 %v531_v20, %v381_v38  ;;  %v8830_v6 = vpop.f32.mrb[3].mxu1 }
 0x18c   : > { %v5018_v37 = vpop.permute.xlu1 %5017 }
 0x18d   : > { %v5022_v22 = vsel %vm5019_vm10, %v10199_v51, %v5018_v37  ;;  %vm11039_vm10 = vcmask 1006592  }
 0x18e   : > { %v4851_v21 = vpop.permute.xlu0 %4850 }
 0x18f   : > { %8614 = vmatmul.mubr.msk.f32.vlgmr.msra.gmra.mrb[0].mxu0 %vm233_vm3, %v8611_v43  ;;  %v4855_v28 = vsel %vm4852_vm9, %v10189_v48, %v4851_v21  ;;  %vm11038_vm9 = vcmask 1014784  }
 0x190   : > { %8619 = vmatpush1.msk.msra.mxu0 %vm237_vm1, %v10305_v3  ;;  %v10593_v30 = vpop.permute.xlu1 %6685  ;;  %8962 = vmatpush3.msk.msra.mxu1 %vm237_vm1, %v4855_v28 }
 0x191   : > { %8624 = vmatprep.subr.msk.mxu0 %vm237_vm1, %v5689_v46  ;;  %8964 = vmatmul.mubr.msk.f32.vlgmr.msra.gmra.mrb[56].mxu1 %vm233_vm3, %v10496_v4  ;;  %v692_v4 = vpop.f32.mrb[4].mxu1  ;;  %v8629_v46 = vld [vmem:[%s11010_s1 + $0x88] sm:$0xf] }
 0x192   : > { %8966 = vmatprep.subr.mxu1 %v9320_v0  ;;  %v10602_v48 = vpop.permute.xlu0 %6683  ;;  %8968 = vmatprep.mubr.msk.f32.mxu1 %vm9321_vm0, %v9320_v0  ;;  %v698_v32 = vadd.f32 %v692_v4, %v532_v29  ;;  %v8835_v50 = vpop.f32.mrb[5].mxu1 }
 0x193   : > { %8967 = vmatpush3.msk.msra.mxu1 %vm237_vm1, %v5022_v22  ;;  %5597 = vmatprep.mubr.f32.mxu0 %v9320_v0  ;;  %v856_v52 = vpop.f32.mrb[6].mxu1 }
 0x194   : > { %v5185_v3 = vpop.permute.xlu1 %5184  ;;  %8971 = vmatprep.subr.mxu1 %v9320_v0  ;;  %v8840_v55 = vpop.f32.mrb[7].mxu1 }
 0x195   : > { %v5189_v51 = vsel %vm5186_vm8, %v10244_v10, %v5185_v3  ;;  %8969 = vmatmul.mubr.msk.f32.vlgmr.msra.gmra.mrb[58].mxu1 %vm233_vm3, %v8599_v36  ;;  %v5856_v10 = vsel %vm5854_vm11, %v10380_v26, %v10411_v24  ;;  %vm11037_vm8 = vmmov %vm11036_vm7  ;;  %v1020_v18 = vpop.f32.mrb[8].mxu1  ;;  %vm11040_vm7 = vcmask 998400  }
 0x196   : > { %8972 = vmatpush3.msk.msra.mxu1 %vm237_vm1, %v5189_v51  ;;  %v10618_v62 = vpop.permute.xlu0 %6681  ;;  %8973 = vmatprep.mubr.msk.f32.mxu1 %vm9321_vm0, %v9320_v0  ;;  %v8845_v45 = vpop.f32.mrb[9].mxu1 }
 0x197   : > { %8620 = vmatmul.mubr.msk.f32.vlgmr.msra.gmra.mrb[0].mxu0 %vm233_vm3, %v10612_v39  ;;  %8976 = vmatprep.subr.mxu1 %v9320_v0  ;;  %v1184_v16 = vpop.f32.mrb[10].mxu1 }
 0x198   : > { %8625 = vmatpush1.msk.msra.mxu0 %vm237_vm1, %v5688_v61  ;;  %v10632_v44 = vpop.permute.xlu1 %6850  ;;  %5764 = vmatprep.mubr.f32.mxu0 %v9320_v0  ;;  %v8850_v26 = vpop.f32.mrb[11].mxu1  ;;  %v6190_v61 = vsel %vm6188_vm13, %v10476_v5, %v10499_v17 }
 0x199   : > { %8630 = vmatprep.subr.msk.mxu0 %vm237_vm1, %v5856_v10  ;;  %8974 = vmatmul.mubr.msk.f32.vlgmr.msra.gmra.mrb[60].mxu1 %vm233_vm3, %v8605_v63  ;;  %v1348_v21 = vpop.f32.mrb[12].mxu1 }
 0x19a   : > { %v5352_v56 = vpop.permute.xlu0 %5351  ;;  %8978 = vmatprep.mubr.msk.f32.mxu1 %vm9321_vm0, %v9320_v0  ;;  %v8855_v3 = vpop.f32.mrb[13].mxu1 }
 0x19b   : > { %v5356_v47 = vsel %vm11037_vm8, %v10249_v59, %v5352_v56  ;;  %v862_v59 = vadd.f32 %v856_v52, %v698_v32  ;;  %v6357_v52 = vsel %vm6355_vm14, %v10530_v9, %v10518_v57  ;;  %vm8148_vm8 = vcmask 965632  }
 0x19c   : > { %v10644_v2 = vpop.permute.xlu1 %6848  ;;  %8977 = vmatpush3.msk.msra.mxu1 %vm237_vm1, %v5356_v47 }
 0x19d   : > { %8979 = vmatmul.mubr.msk.f32.vlgmr.msra.gmra.mrb[62].mxu1 %vm233_vm3, %v8611_v43  ;;  %8981 = vmatprep.subr.mxu1 %v9320_v0  ;;  %v1026_v33 = vadd.f32 %v1020_v18, %v862_v59  ;;  %v6189_v18 = vsel %vm6188_vm13, %v10490_v58, %v10476_v5 }
 0x19e   : > { %v10652_v36 = vpop.permute.xlu0 %6852  ;;  %8983 = vmatprep.mubr.msk.f32.mxu1 %vm9321_vm0, %v9320_v0 }
 0x19f   : > { %8626 = vmatmul.mubr.msk.f32.vlgmr.msra.gmra.mrb[0].mxu0 %vm233_vm3, %v8623_v7  ;;  %v1190_v43 = vadd.f32 %v1184_v16, %v1026_v33 }
 0x1a0   : > { %8631 = vmatpush1.msk.msra.mxu0 %vm237_vm1, %v5855_v15  ;;  %v5686_v63 = vpop.permute.xlu1 %5685  ;;  %5931 = vmatprep.mubr.f32.mxu0 %v9320_v0 }
 0x1a1   : > { %8636 = vmatprep.subr.msk.mxu0 %vm237_vm1, %v6023_v19  ;;  %v1354_v22 = vadd.f32 %v1348_v21, %v1190_v43  ;;  %v5690_v51 = vsel %vm5687_vm6, %v10338_v12, %v5686_v63  ;;  %v6022_v12 = vsel %vm6021_vm12, %v10464_v49, %v10446_v53  ;;  %v6524_v21 = vsel %vm6522_vm15, %v10553_v1, %v10576_v13 }
 0x1a2   : > { %v5519_v37 = vpop.permute.xlu0 %5518  ;;  %vm7820_vm6 = vcmask 982016  }
 0x1a3   : > { %v5523_v54 = vsel %vm5520_vm2, %v10314_v60, %v5519_v37  ;;  %v1512_v60 = vpop.f32.mrb[14].mxu1  ;;  %vm6689_vm2 = vcmask 113664  }
 0x1a4   : > { %v10668_v28 = vpop.permute.xlu1 %7019  ;;  %8982 = vmatpush3.msk.msra.mxu1 %vm237_vm1, %v5523_v54  ;;  %v1518_v10 = vadd.f32 %v1512_v60, %v1354_v22  ;;  %v8860_v14 = vpop.f32.mrb[15].mxu1  ;;  %v6691_v60 = vsel %vm6689_vm2, %v10602_v48, %v10593_v30 }
 0x1a5   : > { %8984 = vmatmul.mubr.msk.f32.vlgmr.msra.gmra.mrb[64].mxu1 %vm233_vm3, %v10612_v39  ;;  %8986 = vmatprep.subr.mxu1 %v9320_v0  ;;  %v1676_v39 = vpop.f32.mrb[16].mxu1 }
 0x1a6   : > { %8987 = vmatpush3.msk.msra.mxu1 %vm237_vm1, %v5690_v51  ;;  %v10683_v38 = vpop.permute.xlu0 %7017  ;;  %8988 = vmatprep.mubr.msk.f32.mxu1 %vm9321_vm0, %v9320_v0  ;;  %v1682_v20 = vadd.f32 %v1676_v39, %v1518_v10  ;;  %v8865_v56 = vpop.f32.mrb[17].mxu1  ;;  %v6523_v10 = vsel %vm6522_vm15, %v10570_v8, %v10553_v1  ;;  %v8665_v1 = vld [vmem:[%s11010_s1 + $0xa0] sm:$0xf]  ;;  %v6690_v39 = vsel %vm6689_vm2, %v10618_v62, %v10602_v48 }
 0x1a7   : > { %8632 = vmatmul.mubr.msk.f32.vlgmr.msra.gmra.mrb[0].mxu0 %vm233_vm3, %v8629_v46  ;;  %8991 = vmatprep.subr.mxu1 %v9320_v0  ;;  %v1840_v53 = vpop.f32.mrb[18].mxu1  ;;  %v6857_v56 = vsel %vm6856_vm4, %v10644_v2, %v10632_v44 }
 0x1a8   : > { %8637 = vmatpush1.msk.msra.mxu0 %vm237_vm1, %v6022_v12  ;;  %v5853_v31 = vpop.permute.xlu1 %5852  ;;  %6098 = vmatprep.mubr.f32.mxu0 %v9320_v0  ;;  %v1846_v6 = vadd.f32 %v1840_v53, %v1682_v20  ;;  %v8870_v41 = vpop.f32.mrb[19].mxu1  ;;  %v8671_v20 = vld [vmem:[%s11010_s1 + $0xa4] sm:$0xf]  ;;  %v7025_v53 = vsel %vm7023_vm5, %v10683_v38, %v10668_v28 }
 0x1a9   : > { %8642 = vmatprep.subr.msk.mxu0 %vm237_vm1, %v6190_v61  ;;  %v5857_v29 = vsel %vm5854_vm11, %v10411_v24, %v5853_v31  ;;  %8989 = vmatmul.mubr.msk.f32.vlgmr.msra.gmra.mrb[66].mxu1 %vm233_vm3, %v8623_v7  ;;  %v2004_v47 = vpop.f32.mrb[20].mxu1  ;;  %v8635_v24 = vld [vmem:[%s11010_s1 + $0x8c] sm:$0xf]  ;;  %v8659_v61 = vld [vmem:[%s11010_s1 + $0x9c] sm:$0xf]  ;;  %v6858_v31 = vsel %vm6856_vm4, %v10632_v44, %v10652_v36  ;;  %vm7984_vm11 = vcmask 973824  }
 0x1aa   : > { %8992 = vmatpush3.msk.msra.mxu1 %vm237_vm1, %v5857_v29  ;;  %v10699_v49 = vpop.permute.xlu0 %7015  ;;  %8993 = vmatprep.mubr.msk.f32.mxu1 %vm9321_vm0, %v9320_v0  ;;  %v2010_v7 = vadd.f32 %v2004_v47, %v1846_v6  ;;  %v8875_v32 = vpop.f32.mrb[21].mxu1  ;;  %v8683_v6 = vld [vmem:[%s11010_s1 + $0xac] sm:$0xf] }
 0x1ab   : > { %8996 = vmatprep.subr.mxu1 %v9320_v0  ;;  %v2168_v50 = vpop.f32.mrb[22].mxu1  ;;  %v7024_v41 = vsel %vm7023_vm5, %v10699_v49, %v10683_v38  ;;  %v8701_v32 = vld [vmem:[%s11010_s1 + $0xb8] sm:$0xf] }
 0x1ac   : > { %v10704_v4 = vpop.permute.xlu1 %7182  ;;  %v2174_v55 = vadd.f32 %v2168_v50, %v2010_v7  ;;  %v8880_v15 = vpop.f32.mrb[23].mxu1  ;;  %v8695_v7 = vld [vmem:[%s11010_s1 + $0xb4] sm:$0xf] }
 0x1ad   : > { %8994 = vmatmul.mubr.msk.f32.vlgmr.msra.gmra.mrb[68].mxu1 %vm233_vm3, %v8629_v46  ;;  %v2332_v63 = vpop.f32.mrb[24].mxu1  ;;  %v7184_v38 = vsel %vm11038_vm9, %v9613_v23, %v10704_v4  ;;  %v8707_v23 = vld [vmem:[%s11010_s1 + $0xbc] sm:$0xf] }
 0x1ae   : > { %v6020_v59 = vpop.permute.xlu0 %6019  ;;  %8998 = vmatprep.mubr.msk.f32.mxu1 %vm9321_vm0, %v9320_v0  ;;  %v2338_v45 = vadd.f32 %v2332_v63, %v2174_v55  ;;  %v8885_v16 = vpop.f32.mrb[25].mxu1 }
 0x1af   : > { %8638 = vmatmul.mubr.msk.f32.vlgmr.msra.gmra.mrb[0].mxu0 %vm233_vm3, %v8635_v24  ;;  %v6024_v19 = vsel %vm6021_vm12, %v10437_v11, %v6020_v59  ;;  %v2496_v37 = vpop.f32.mrb[26].mxu1  ;;  %v8641_v11 = vld [vmem:[%s11010_s1 + $0x90] sm:$0xf]  ;;  %v8713_v59 = vld [vmem:[%s11010_s1 + $0xc0] sm:$0xf] }
 0x1b0   : > { %8643 = vmatpush1.msk.msra.mxu0 %vm237_vm1, %v6189_v18  ;;  %v6354_v33 = vpop.permute.xlu1 %6353  ;;  %8997 = vmatpush3.msk.msra.mxu1 %vm237_vm1, %v6024_v19  ;;  %v10731_v5 = vadd.f32 %v2496_v37, %v2338_v45  ;;  %v8890_v58 = vpop.f32.mrb[27].mxu1 }
 0x1b1   : > { %8648 = vmatprep.subr.msk.mxu0 %vm237_vm1, %v6357_v52  ;;  %8999 = vmatmul.mubr.msk.f32.vlgmr.msra.gmra.mrb[70].mxu1 %vm233_vm3, %v8635_v24  ;;  %v6358_v54 = vsel %vm6355_vm14, %v10518_v57, %v6354_v33  ;;  %v6356_v57 = vsel %vm6355_vm14, %v10548_v40, %v10530_v9  ;;  %v8653_v9 = vld [vmem:[%s11010_s1 + $0x98] sm:$0xf] }
 0x1b2   : > { %v6187_v43 = vpop.permute.xlu0 %6186  ;;  %9001 = vmatprep.subr.mxu1 %v9320_v0  ;;  %9003 = vmatprep.mubr.msk.f32.mxu1 %vm9321_vm0, %v9320_v0 }
 0x1b3   : > { %v6191_v26 = vsel %vm6188_vm13, %v10499_v17, %v6187_v43  ;;  %6265 = vmatprep.mubr.f32.mxu0 %v9320_v0  ;;  %v8647_v17 = vld [vmem:[%s11010_s1 + $0x94] sm:$0xf] }
 0x1b4   : > { %9002 = vmatpush3.msk.msra.mxu1 %vm237_vm1, %v6191_v26  ;;  %v6521_v46 = vpop.permute.xlu1 %6520 }
 0x1b5   : > { %9004 = vmatmul.mubr.msk.f32.vlgmr.msra.gmra.mrb[72].mxu1 %vm233_vm3, %v8641_v11  ;;  %9006 = vmatprep.subr.mxu1 %v9320_v0  ;;  %v6525_v22 = vsel %vm6522_vm15, %v10576_v13, %v6521_v46 }
 0x1b6   : > { %9007 = vmatpush3.msk.msra.mxu1 %vm237_vm1, %v6358_v54  ;;  %9008 = vmatprep.mubr.msk.f32.mxu1 %vm9321_vm0, %v9320_v0  ;;  %v10756_v3 = vpop.permute.xlu0 %7338 }
 0x1b7   : > { %8644 = vmatmul.mubr.msk.f32.vlgmr.msra.gmra.mrb[0].mxu0 %vm233_vm3, %v8641_v11  ;;  %9011 = vmatprep.subr.mxu1 %v9320_v0  ;;  %v7340_v52 = vsel %vm11039_vm10, %v9620_v25, %v10756_v3 }
 0x1b8   : > { %8649 = vmatpush1.msk.msra.mxu0 %vm237_vm1, %v6356_v57  ;;  %6432 = vmatprep.mubr.f32.mxu0 %v9320_v0  ;;  %v10770_v13 = vpop.permute.xlu1 %7494 }
 0x1b9   : > { %8654 = vmatprep.subr.msk.mxu0 %vm237_vm1, %v6524_v21  ;;  %9009 = vmatmul.mubr.msk.f32.vlgmr.msra.gmra.mrb[74].mxu1 %vm233_vm3, %v8647_v17  ;;  %v7496_v25 = vsel %vm11040_vm7, %v9667_v35, %v10770_v13 }
 0x1ba   : > { %9012 = vmatpush3.msk.msra.mxu1 %vm237_vm1, %v6525_v22  ;;  %9013 = vmatprep.mubr.msk.f32.mxu1 %vm9321_vm0, %v9320_v0 }
 0x1bb   : > { %v6688_v40 = vpop.permute.xlu0 %6687  ;;  %9016 = vmatprep.subr.mxu1 %v9320_v0 }
 0x1bc   : > { %v6692_v51 = vsel %vm6689_vm2, %v10593_v30, %v6688_v40 }
 0x1bd   : > { %9014 = vmatmul.mubr.msk.f32.vlgmr.msra.gmra.mrb[76].mxu1 %vm233_vm3, %v8653_v9  ;;  %v7022_v12 = vpop.permute.xlu1 %7021 }
 0x1be   : > { %9017 = vmatpush3.msk.msra.mxu1 %vm237_vm1, %v6692_v51  ;;  %9018 = vmatprep.mubr.msk.f32.mxu1 %vm9321_vm0, %v9320_v0  ;;  %v7026_v8 = vsel %vm7023_vm5, %v10668_v28, %v7022_v12  ;;  %v8689_v28 = vld [vmem:[%s11010_s1 + $0xb0] sm:$0xf] }
 0x1bf   : > { %8650 = vmatmul.mubr.msk.f32.vlgmr.msra.gmra.mrb[0].mxu0 %vm233_vm3, %v8647_v17  ;;  %v6855_v14 = vpop.permute.xlu0 %6854  ;;  %9021 = vmatprep.subr.mxu1 %v9320_v0 }
 0x1c0   : > { %8655 = vmatpush1.msk.msra.mxu0 %vm237_vm1, %v6523_v10  ;;  %v6859_v30 = vsel %vm6856_vm4, %v10652_v36, %v6855_v14  ;;  %6599 = vmatprep.mubr.f32.mxu0 %v9320_v0  ;;  %v8677_v36 = vld [vmem:[%s11010_s1 + $0xa8] sm:$0xf] }
 0x1c1   : > { %8660 = vmatprep.subr.msk.mxu0 %vm237_vm1, %v6691_v60  ;;  %9019 = vmatmul.mubr.msk.f32.vlgmr.msra.gmra.mrb[78].mxu1 %vm233_vm3, %v8659_v61  ;;  %v10825_v62 = vpop.permute.xlu1 %7654 }
 0x1c2   : > { %9022 = vmatpush3.msk.msra.mxu1 %vm237_vm1, %v6859_v30  ;;  %9023 = vmatprep.mubr.msk.f32.mxu1 %vm9321_vm0, %v9320_v0 }
 0x1c3   : > { %9026 = vmatprep.subr.mxu1 %v9320_v0  ;;  %v10819_v48 = vpop.permute.xlu0 %7652 }
 0x1c5   : > { %9024 = vmatmul.mubr.msk.f32.vlgmr.msra.gmra.mrb[80].mxu1 %vm233_vm3, %v8665_v1  ;;  %v10853_v44 = vpop.permute.xlu1 %7816 }
 0x1c6   : > { %9027 = vmatpush3.msk.msra.mxu1 %vm237_vm1, %v7026_v8  ;;  %9028 = vmatprep.mubr.msk.f32.mxu1 %vm9321_vm0, %v9320_v0 }
 0x1c7   : > { %8656 = vmatmul.mubr.msk.f32.vlgmr.msra.gmra.mrb[0].mxu0 %vm233_vm3, %v8653_v9  ;;  %9031 = vmatprep.subr.mxu1 %v9320_v0 }
 0x1c8   : > { %8661 = vmatpush1.msk.msra.mxu0 %vm237_vm1, %v6690_v39  ;;  %6766 = vmatprep.mubr.f32.mxu0 %v9320_v0 }
 0x1c9   : > { %9029 = vmatmul.mubr.msk.f32.vlgmr.msra.gmra.mrb[82].mxu1 %vm233_vm3, %v8671_v20  ;;  %8666 = vmatprep.subr.msk.mxu0 %vm237_vm1, %v6858_v31 }
 0x1ca   : > { %9032 = vmatpush3.msk.msra.mxu1 %vm237_vm1, %v10704_v4  ;;  %9033 = vmatprep.mubr.msk.f32.mxu1 %vm9321_vm0, %v9320_v0 }
 0x1cb   : > { %9036 = vmatprep.subr.mxu1 %v9320_v0 }
 0x1cd   : > { %9034 = vmatmul.mubr.msk.f32.vlgmr.msra.gmra.mrb[84].mxu1 %vm233_vm3, %v8677_v36  ;;  %v10839_v29 = vpop.permute.xlu0 %7650 }
 0x1ce   : > { %9037 = vmatpush3.msk.msra.mxu1 %vm237_vm1, %v10756_v3  ;;  %9038 = vmatprep.mubr.msk.f32.mxu1 %vm9321_vm0, %v9320_v0  ;;  %v7815_v47 = vpop.permute.xlu1 %7814 }
 0x1cf   : > { %8662 = vmatmul.mubr.msk.f32.vlgmr.msra.gmra.mrb[0].mxu0 %vm233_vm3, %v8659_v61  ;;  %9041 = vmatprep.subr.mxu1 %v9320_v0 }
 0x1d0   : > { %8667 = vmatpush1.msk.msra.mxu0 %vm237_vm1, %v6857_v56  ;;  %6933 = vmatprep.mubr.f32.mxu0 %v9320_v0 }
 0x1d1   : > { %9039 = vmatmul.mubr.msk.f32.vlgmr.msra.gmra.mrb[86].mxu1 %vm233_vm3, %v8683_v6  ;;  %8672 = vmatprep.subr.msk.mxu0 %vm237_vm1, %v7025_v53  ;;  %v7819_v2 = vpop.permute.xlu0 %7818 }
 0x1d2   : > { %9042 = vmatpush3.msk.msra.mxu1 %vm237_vm1, %v10770_v13  ;;  %9043 = vmatprep.mubr.msk.f32.mxu1 %vm9321_vm0, %v9320_v0  ;;  %v7822_v35 = vsel %vm7820_vm6, %v10853_v44, %v7819_v2 }
 0x1d3   : > { %9046 = vmatprep.subr.mxu1 %v9320_v0 }
 0x1d5   : > { %9044 = vmatmul.mubr.msk.f32.vlgmr.msra.gmra.mrb[88].mxu1 %vm233_vm3, %v8689_v28  ;;  %v7981_v24 = vpop.permute.xlu0 %7980 }
 0x1d6   : > { %9047 = vmatpush3.msk.msra.mxu1 %vm237_vm1, %v10825_v62  ;;  %9048 = vmatprep.mubr.msk.f32.mxu1 %vm9321_vm0, %v9320_v0  ;;  %v7983_v50 = vpop.permute.xlu1 %7982 }
 0x1d7   : > { %8668 = vmatmul.mubr.msk.f32.vlgmr.msra.gmra.mrb[0].mxu0 %vm233_vm3, %v8665_v1  ;;  %9051 = vmatprep.subr.mxu1 %v9320_v0  ;;  %v7986_v55 = vsel %vm7984_vm11, %v7981_v24, %v7983_v50 }
 0x1d8   : > { %8673 = vmatpush1.msk.msra.mxu0 %vm237_vm1, %v7024_v41  ;;  %7100 = vmatprep.mubr.f32.mxu0 %v9320_v0 }
 0x1d9   : > { %8678 = vmatprep.subr.msk.mxu0 %vm237_vm1, %v7184_v38  ;;  %9049 = vmatmul.mubr.msk.f32.vlgmr.msra.gmra.mrb[90].mxu1 %vm233_vm3, %v8695_v7  ;;  %v7979_v49 = vpop.permute.xlu0 %7978 }
 0x1da   : > { %9052 = vmatpush3.msk.msra.mxu1 %vm237_vm1, %v7819_v2  ;;  %9053 = vmatprep.mubr.msk.f32.mxu1 %vm9321_vm0, %v9320_v0  ;;  %v7985_v18 = vsel %vm7984_vm11, %v7979_v49, %v7981_v24 }
 0x1db   : > { %9056 = vmatprep.subr.mxu1 %v9320_v0 }
 0x1dd   : > { %9054 = vmatmul.mubr.msk.f32.vlgmr.msra.gmra.mrb[92].mxu1 %vm233_vm3, %v8701_v32 }
 0x1de   : > { %9057 = vmatpush3.msk.msra.mxu1 %vm237_vm1, %v7983_v50  ;;  %9058 = vmatprep.mubr.msk.f32.mxu1 %vm9321_vm0, %v9320_v0  ;;  %v8147_v4 = vpop.permute.xlu0 %8146 }
 0x1df   : > { %8674 = vmatmul.mubr.msk.f32.vlgmr.msra.gmra.mrb[0].mxu0 %vm233_vm3, %v8671_v20  ;;  %9061 = vmatprep.subr.mxu1 %v9320_v0  ;;  %v8145_v15 = vpop.permute.xlu1 %8144 }
 0x1e0   : > { %8679 = vmatpush1.msk.msra.mxu0 %vm237_vm1, %v9629_v27  ;;  %7256 = vmatprep.mubr.f32.mxu0 %v9320_v0  ;;  %v8150_v19 = vsel %vm8148_vm8, %v8145_v15, %v8147_v4 }
 0x1e1   : > { %8684 = vmatprep.subr.msk.mxu0 %vm237_vm1, %v7340_v52  ;;  %9059 = vmatmul.mubr.msk.f32.vlgmr.msra.gmra.mrb[94].mxu1 %vm233_vm3, %v8707_v23 }
 0x1e2   : > { %9062 = vmatpush3.msk.msra.mxu1 %vm237_vm1, %v8147_v4  ;;  %9063 = vmatprep.mubr.msk.f32.mxu1 %vm9321_vm0, %v9320_v0  ;;  %vm7656_vm0 = vcmask 990208  }
 0x1e3   : > { %v7658_v27 = vsel %vm7656_vm0, %v10819_v48, %v10825_v62 }
 0x1e5   : > { %9064 = vmatmul.mubr.msk.f32.vlgmr.msra.gmra.mrb[96].mxu1 %vm233_vm3, %v8713_v59  ;;  %v8143_v63 = vpop.permute.xlu1 %8142 }
 0x1e6   : > { %v8149_v33 = vsel %vm8148_vm8, %v8143_v63, %v8145_v15 }
 0x1e7   : > { %8680 = vmatmul.mubr.msk.f32.vlgmr.msra.gmra.mrb[0].mxu0 %vm233_vm3, %v8677_v36 }
 0x1e8   : > { %8685 = vmatpush1.msk.msra.mxu0 %vm237_vm1, %v9659_v34  ;;  %7412 = vmatprep.mubr.f32.mxu0 %v9320_v0  ;;  %v7657_v34 = vsel %vm7656_vm0, %v10839_v29, %v10819_v48 }
 0x1e9   : > { %8690 = vmatprep.subr.msk.mxu0 %vm237_vm1, %v7496_v25 }
 0x1ef   : > { %8686 = vmatmul.mubr.msk.f32.vlgmr.msra.gmra.mrb[0].mxu0 %vm233_vm3, %v8683_v6 }
 0x1f0   : > { %8691 = vmatpush1.msk.msra.mxu0 %vm237_vm1, %v9696_v42  ;;  %7568 = vmatprep.mubr.f32.mxu0 %v9320_v0  ;;  %v7821_v42 = vsel %vm7820_vm6, %v7815_v47, %v10853_v44 }
 0x1f1   : > { %8696 = vmatprep.subr.msk.mxu0 %vm237_vm1, %v7658_v27 }
 0x1f7   : > { %8692 = vmatmul.mubr.msk.f32.vlgmr.msra.gmra.mrb[0].mxu0 %vm233_vm3, %v8689_v28 }
 0x1f8   : > { %8697 = vmatpush1.msk.msra.mxu0 %vm237_vm1, %v7657_v34  ;;  %7732 = vmatprep.mubr.f32.mxu0 %v9320_v0 }
 0x1f9   : > { %8702 = vmatprep.subr.msk.mxu0 %vm237_vm1, %v7822_v35 }
 0x1ff   : > { %8698 = vmatmul.mubr.msk.f32.vlgmr.msra.gmra.mrb[0].mxu0 %vm233_vm3, %v8695_v7 }
 0x200   : > { %8703 = vmatpush1.msk.msra.mxu0 %vm237_vm1, %v7821_v42  ;;  %7896 = vmatprep.mubr.f32.mxu0 %v9320_v0 }
 0x201   : > { %8708 = vmatprep.subr.msk.mxu0 %vm237_vm1, %v7986_v55 }
 0x207   : > { %8704 = vmatmul.mubr.msk.f32.vlgmr.msra.gmra.mrb[0].mxu0 %vm233_vm3, %v8701_v32 }
 0x208   : > { %8709 = vmatpush1.msk.msra.mxu0 %vm237_vm1, %v7985_v18  ;;  %8060 = vmatprep.mubr.f32.mxu0 %v9320_v0 }
 0x209   : > { %8714 = vmatprep.subr.msk.mxu0 %vm237_vm1, %v8150_v19 }
 0x20f   : > { %8710 = vmatmul.mubr.msk.f32.vlgmr.msra.gmra.mrb[0].mxu0 %vm233_vm3, %v8707_v23 }
 0x210   : > { %8715 = vmatpush1.msk.msra.mxu0 %vm237_vm1, %v8149_v33  ;;  %8224 = vmatprep.mubr.f32.mxu0 %v9320_v0 }
 0x217   : > { %8716 = vmatmul.mubr.msk.f32.vlgmr.msra.gmra.mrb[0].mxu0 %vm233_vm3, %v8713_v59  ;;  %vm8331_vm3 = vcmask 781312  }
 0x21b   : > { %v2664_v45 = vpop.f32.mrb[28].mxu1 }
 0x21c   : > { %v2670_v16 = vadd.f32 %v2664_v45, %v10731_v5  ;;  %v8895_v37 = vpop.f32.mrb[29].mxu1 }
 0x220   : > { %v2831_v43 = vpop.f32.mrb[30].mxu1 }
 0x221   : > { %v2837_v11 = vadd.f32 %v2831_v43, %v2670_v16  ;;  %v8900_v58 = vpop.f32.mrb[31].mxu1 }
 0x228   : > { %v2998_v26 = vpop.f32.mrb[32].mxu1 }
 0x229   : > { %v3004_v54 = vadd.f32 %v2998_v26, %v2837_v11  ;;  %v8905_v21 = vpop.f32.mrb[33].mxu1 }
 0x22c   : > { %v3165_v46 = vpop.f32.mrb[34].mxu1 }
 0x22d   : > { %v3171_v17 = vadd.f32 %v3165_v46, %v3004_v54  ;;  %v8910_v57 = vpop.f32.mrb[35].mxu1 }
 0x230   : > { %v3332_v22 = vpop.f32.mrb[36].mxu1 }
 0x231   : > { %v3338_v3 = vadd.f32 %v3332_v22, %v3171_v17  ;;  %v8915_v9 = vpop.f32.mrb[37].mxu1 }
 0x235   : > { %v3499_v40 = vpop.f32.mrb[38].mxu1 }
 0x236   : > { %v3505_v0 = vadd.f32 %v3499_v40, %v3338_v3  ;;  %v8920_v13 = vpop.f32.mrb[39].mxu1 }
 0x23d   : > { %v3666_v51 = vpop.f32.mrb[40].mxu1 }
 0x23e   : > { %v3672_v60 = vadd.f32 %v3666_v51, %v3505_v0  ;;  %v8925_v61 = vpop.f32.mrb[41].mxu1 }
 0x241   : > { %v3833_v5 = vpop.f32.mrb[42].mxu1 }
 0x242   : > { %v3839_v10 = vadd.f32 %v3833_v5, %v3672_v60  ;;  %v8930_v14 = vpop.f32.mrb[43].mxu1 }
 0x245   : > { %v4000_v30 = vpop.f32.mrb[44].mxu1 }
 0x246   : > { %v4006_v12 = vadd.f32 %v4000_v30, %v3839_v10  ;;  %v8935_v1 = vpop.f32.mrb[45].mxu1 }
 0x249   : > { %v4167_v8 = vpop.f32.mrb[46].mxu1 }
 0x24a   : > { %v4173_v39 = vadd.f32 %v4167_v8, %v4006_v12  ;;  %v8940_v31 = vpop.f32.mrb[47].mxu1 }
 0x250   : > { %v4334_v20 = vpop.f32.mrb[48].mxu1 }
 0x251   : > { %v4340_v48 = vadd.f32 %v4334_v20, %v4173_v39  ;;  %v8945_v62 = vpop.f32.mrb[49].mxu1 }
 0x254   : > { %v4501_v36 = vpop.f32.mrb[50].mxu1 }
 0x255   : > { %v4507_v56 = vadd.f32 %v4501_v36, %v4340_v48  ;;  %v8950_v29 = vpop.f32.mrb[51].mxu1 }
 0x258   : > { %v4668_v53 = vpop.f32.mrb[52].mxu1 }
 0x259   : > { %v4674_v6 = vadd.f32 %v4668_v53, %v4507_v56  ;;  %v8955_v44 = vpop.f32.mrb[53].mxu1 }
 0x25c   : > { %v4835_v2 = vpop.f32.mrb[54].mxu1 }
 0x25d   : > { %v4841_v28 = vadd.f32 %v4835_v2, %v4674_v6  ;;  %v8960_v41 = vpop.f32.mrb[55].mxu1  ;;  %v8308_v2 = vpop.permute.xlu0 %8307 }
 0x264   : > { %v5002_v47 = vpop.f32.mrb[56].mxu1 }
 0x265   : > { %v5008_v24 = vadd.f32 %v5002_v47, %v4841_v28  ;;  %v8965_v7 = vpop.f32.mrb[57].mxu1 }
 0x268   : > { %v5169_v38 = vpop.f32.mrb[58].mxu1 }
 0x269   : > { %v5175_v49 = vadd.f32 %v5169_v38, %v5008_v24  ;;  %v8970_v32 = vpop.f32.mrb[59].mxu1  ;;  %v8323_v24 = vld [vmem:[%s215_s14 + $0x8] sm:$0xf] }
 0x26c   : > { %v5336_v50 = vpop.f32.mrb[60].mxu1 }
 0x26d   : > { %v5342_v23 = vadd.f32 %v5336_v50, %v5175_v49  ;;  %v8975_v4 = vpop.f32.mrb[61].mxu1 }
 0x270   : > { %v5503_v52 = vpop.f32.mrb[62].mxu1 }
 0x271   : > { %v5509_v59 = vadd.f32 %v5503_v52, %v5342_v23  ;;  %v8980_v25 = vpop.f32.mrb[63].mxu1 }
 0x278   : > { %v5670_v27 = vpop.f32.mrb[64].mxu1 }
 0x279   : > { %v5676_v34 = vadd.f32 %v5670_v27, %v5509_v59  ;;  %v8985_v35 = vpop.f32.mrb[65].mxu1 }
 0x27c   : > { %v5837_v42 = vpop.f32.mrb[66].mxu1 }
 0x27d   : > { %v5843_v55 = vadd.f32 %v5837_v42, %v5676_v34  ;;  %v8990_v15 = vpop.f32.mrb[67].mxu1  ;;  %v8322_v34 = vld [vmem:[%s215_s14] sm:$0xff] }
 0x280   : > { %v6004_v18 = vpop.f32.mrb[68].mxu1 }
 0x281   : > { %v6010_v19 = vadd.f32 %v6004_v18, %v5843_v55  ;;  %v8995_v63 = vpop.f32.mrb[69].mxu1 }
 0x284   : > { %v6171_v33 = vpop.f32.mrb[70].mxu1 }
 0x285   : > { %v6177_v45 = vadd.f32 %v6171_v33, %v6010_v19  ;;  %v9000_v16 = vpop.f32.mrb[71].mxu1 }
 0x288   : > { %v6338_v37 = vpop.f32.mrb[72].mxu1 }
 0x289   : > { %v6344_v43 = vadd.f32 %v6338_v37, %v6177_v45  ;;  %v9005_v11 = vpop.f32.mrb[73].mxu1 }
 0x28c   : > { %v6505_v58 = vpop.f32.mrb[74].mxu1 }
 0x28d   : > { %v6511_v26 = vadd.f32 %v6505_v58, %v6344_v43  ;;  %v9010_v54 = vpop.f32.mrb[75].mxu1 }
 0x290   : > { %v6672_v21 = vpop.f32.mrb[76].mxu1 }
 0x291   : > { %v6678_v46 = vadd.f32 %v6672_v21, %v6511_v26  ;;  %v9015_v17 = vpop.f32.mrb[77].mxu1 }
 0x294   : > { %v6839_v57 = vpop.f32.mrb[78].mxu1 }
 0x295   : > { %v6845_v22 = vadd.f32 %v6839_v57, %v6678_v46  ;;  %v9020_v3 = vpop.f32.mrb[79].mxu1 }
 0x298   : > { %v7006_v9 = vpop.f32.mrb[80].mxu1 }
 0x299   : > { %v7012_v40 = vadd.f32 %v7006_v9, %v6845_v22  ;;  %v9025_v0 = vpop.f32.mrb[81].mxu1 }
 0x29c   : > { %v7173_v13 = vpop.f32.mrb[82].mxu1 }
 0x29d   : > { %v7179_v51 = vadd.f32 %v7173_v13, %v7012_v40  ;;  %v9030_v60 = vpop.f32.mrb[83].mxu1 }
 0x2a0   : > { %v7329_v61 = vpop.f32.mrb[84].mxu1 }
 0x2a1   : > { %v7335_v5 = vadd.f32 %v7329_v61, %v7179_v51  ;;  %v9035_v10 = vpop.f32.mrb[85].mxu1 }
 0x2a4   : > { %v7485_v14 = vpop.f32.mrb[86].mxu1 }
 0x2a5   : > { %v7491_v30 = vadd.f32 %v7485_v14, %v7335_v5  ;;  %v9040_v12 = vpop.f32.mrb[87].mxu1 }
 0x2a8   : > { %v7641_v1 = vpop.f32.mrb[88].mxu1 }
 0x2a9   : > { %v7647_v8 = vadd.f32 %v7641_v1, %v7491_v30  ;;  %v9045_v39 = vpop.f32.mrb[89].mxu1 }
 0x2ac   : > { %v7805_v31 = vpop.f32.mrb[90].mxu1 }
 0x2ad   : > { %v7811_v20 = vadd.f32 %v7805_v31, %v7647_v8  ;;  %v9050_v48 = vpop.f32.mrb[91].mxu1 }
 0x2b0   : > { %v7969_v62 = vpop.f32.mrb[92].mxu1 }
 0x2b1   : > { %v7975_v36 = vadd.f32 %v7969_v62, %v7811_v20  ;;  %v9055_v56 = vpop.f32.mrb[93].mxu1 }
 0x2b4   : > { %v8133_v29 = vpop.f32.mrb[94].mxu1 }
 0x2b5   : > { %v8139_v53 = vadd.f32 %v8133_v29, %v7975_v36  ;;  %v9060_v6 = vpop.f32.mrb[95].mxu1 }
 0x2b8   : > { %v8297_v44 = vpop.f32.mrb[96].mxu1 }
 0x2b9   : > { %v8303_v28 = vadd.f32 %v8297_v44, %v8139_v53  ;;  %v9065_v41 = vpop.f32.mrb[97].mxu1 }
 0x2bb   : > { %v8312_v47 = vadd.f32 %v8308_v2, %v8303_v28 }
 0x2bd   : > { %vm8315_vm1 = vcmp.ge.f32.partialorder %v8312_v47, 0.0  ;;  %v8318_v7 = vmul.f32 0.1, %v8312_v47 }
 0x2bf   : > { %v8321_v38 = vsel %vm8315_vm1, %v8312_v47, %v8318_v7 }
 0x2c0   : > { %v8329_v49 = vadd.f32 %v8323_v24, %v8321_v38 }
 0x2c2   : > { %8332 = vst.msk [vmem:[%s205_s27 + $0x8] sm:$0xf] %vm8331_vm3, %v8329_v49 }
 0x2ea   : > { %v8226_v32 = vpop.f32.mrb[0].mxu0 }
 0x2eb   : > { %v8310_v50 = vadd.f32 %v8308_v2, %v8226_v32  ;;  %v8228_v23 = vpop.f32.mrb[1].mxu0 }
 0x2ec   : > { %v8311_v4 = vadd.f32 %v8308_v2, %v8228_v23 }
 0x2ed   : > { %vm8313_vm12 = vcmp.ge.f32.partialorder %v8310_v50, 0.0  ;;  %v8316_v52 = vmul.f32 0.1, %v8310_v50 }
 0x2ee   : > { %vm8314_vm13 = vcmp.ge.f32.partialorder %v8311_v4, 0.0  ;;  %v8317_v59 = vmul.f32 0.1, %v8311_v4 }
 0x2ef   : > { %v8319_v25 = vsel %vm8313_vm12, %v8310_v50, %v8316_v52 }
 0x2f0   : > { %v8320_v27 = vsel %vm8314_vm13, %v8311_v4, %v8317_v59 }
 0x2f1   : > { %v8326_v35 = vcombine.low %v8319_v25, %v8320_v27 }
 0x2f3   : > { %v8328_v42 = vadd.f32 %v8326_v35, %v8322_v34 }
 0x2f5   : > { %8330 = vst [vmem:[%s205_s27] sm:$0xff] %v8328_v42 }
 0x2f6   : > { %9269 = shalt.err (!%p9266_p3)
}
 0x2f7   : > { %s9270_s29 = scalar_lea.hbm %s10965_s9, 192  ;;  %s9274_s7 = scalar_lea.hbm %s11013_s4, 384 }
 0x2f8   : > { %p9271_p4 = scmp.ne.s32.totalorder %s10965_s9, %s9270_s29  ;;  %p9275_p9 = scmp.lt.u32.totalorder %s10965_s9, %s11013_s4 }
 0x2f9   : > { %p9276_p10 = scmp.lt.u32.totalorder %s9274_s7, %s9270_s29  ;;  %p9278_p12 = scmp.lt.u32.totalorder %s9270_s29, %s10965_s9 }
 0x2fa   : > { %p9272_p7 = pnand %p9271_p4, %p9432_p5 }
 0x2fb   : > { %p9277_p11 = por %p9276_p10, %p9275_p9 }
 0x2fc   : > { %p9273_p8 = pneg %p9272_p7 }
 0x2fd   : > { %p9279_p13 = por %p9278_p12, %p9277_p11 }
 0x2ff   : > { %p9280_p0 = pnand %p9279_p13, %p9273_p8 }
 0x301   : > { %9283 = shalt.err (!%p9280_p0)
}
 0x302   : > { %9165 = dma.vmem_to_hbm [thread:$0]  (%p9432_p5), %s10967_s28, 192, %s10965_s9, %s8334_s10  }
 0x303 PF: > { %p9171_p1 = scmp.ge.s32.totalorder %s9318_s18, 2  ;;  %s8360_s8 = sand.u32 1, %s9306_s15  }
 0x304   : > { %s8361_s27 = scalar_lea.sflag [#allocation3], %s8360_s8 }
 0x305   : > { %p9168_p2 = pnand %p9171_p1, %p9436_p6 }
 0x307   : > { %9301 = dma.done.wait (!%p9168_p2), %s8361_s27, 192  }
 0x308   : > { %9303 = vsyncadd (!%p9168_p2), %s8361_s27, 4294967104  ;;  %p14_p3 = scmp.ge.s32.totalorder %s9419_s21, 4   ;;  %s11041_s15 = smov %s9310_s16 }
 0x309   : > { %s11042_s16 = smov %s9314_s17  ;;  %s11043_s17 = smov %s9430_s24 }
 0x30a   : > { %s11044_s18 = smov %s9419_s21  ;;  %16 = sbr.rel (!%p14_p3) target bundleno = 3 (0x3), region = 122 }
 0x311   :  { %8366 = vsyncpa [#allocation3], 1 }
 0x312   :  { %8368 = vsyncpa [#allocation3 + $0x1], 1 }

</bundles_post_ra>
